<compile_context>
chip_gen: v7x
topology: tpu7x:2x2x1
jax: 0.10.0
libtpu: 0.0.40
codegen_flags: <defaults>
</compile_context>

<pallas_src>
import functools
import math

import jax
import jax.numpy as jnp
from jax.experimental import pallas as pl
from jax.experimental.pallas import tpu as pltpu

_LN_EPS = 1e-3  # LayerNorm(dim, eps=0.001) in the reference module


def _layer_norm_fused(h, gamma, beta):
    # Single-pass LayerNorm: var = E[x^2] - mean^2 (clamped), eps inside rsqrt.
    mu = jnp.mean(h, axis=-1, keepdims=True)
    msq = jnp.mean(h * h, axis=-1, keepdims=True)
    var = jnp.maximum(msq - mu * mu, 0.0)
    return (h - mu) * jax.lax.rsqrt(var + _LN_EPS) * gamma + beta


def vector_mlp_kernel(x_ref, w1_ref, ln1_ref, w2_ref, ln2_ref, wh_ref, bh_ref,
                      o_ref):
    # x streamed as bf16; all math in f32 (v5e VPU/EUP have no bf16).
    x = x_ref[...].astype(jnp.float32)

    # Block 1: Linear(no bias) -> LayerNorm -> SiLU
    h = jnp.dot(x, w1_ref[...], preferred_element_type=jnp.float32)
    h = _layer_norm_fused(h, ln1_ref[0:1, :], ln1_ref[1:2, :])
    h = h * jax.nn.sigmoid(h)

    # Block 2: Linear(no bias) -> LayerNorm -> SiLU
    h = jnp.dot(h, w2_ref[...], preferred_element_type=jnp.float32)
    h = _layer_norm_fused(h, ln2_ref[0:1, :], ln2_ref[1:2, :])
    h = h * jax.nn.sigmoid(h)

    # Head: Linear(H -> out_dim, bias=True), no norm / activation.
    out = jnp.dot(h, wh_ref[...], preferred_element_type=jnp.float32) + bh_ref[...]

    o_ref[...] = out.astype(o_ref.dtype)


@functools.partial(jax.jit, static_argnames=("tb",))
def vector_mlp_forward(x, params, *, tb=256):
    w1, g1, b1, w2, g2, b2, wh, bh = params
    B, in_dim = x.shape
    h1 = w1.shape[1]
    h2 = w2.shape[1]
    out_dim = wh.shape[1]

    # Pack tiny per-layer LN params -> fewer DMA descriptors / buffers.
    ln1 = jnp.stack([g1, b1], axis=0)      # (2, h1)
    ln2 = jnp.stack([g2, b2], axis=0)      # (2, h2)
    bh2 = bh.reshape(1, out_dim)

    # Stream x as bf16 (halves HBM traffic on the only B-scaling input).
    x_bf = x.astype(jnp.bfloat16)
    n_tiles = pl.cdiv(B, tb)
    b_pad = n_tiles * tb
    if b_pad != B:
        x_bf = jnp.pad(x_bf, ((0, b_pad - B), (0, 0)))

    out = pl.pallas_call(
        vector_mlp_kernel,
        out_shape=jax.ShapeDtypeStruct((b_pad, out_dim), jnp.float32),
        grid=(n_tiles,),
        in_specs=[
            # x: one (TB, in_dim) tile per grid step (auto double-buffered).
            pl.BlockSpec((tb, in_dim), lambda i: (i, 0)),
            # Weights / params: constant block index -> resident in VMEM.
            pl.BlockSpec((in_dim, h1), lambda i: (0, 0)),
            pl.BlockSpec((2, h1), lambda i: (0, 0)),
            pl.BlockSpec((h1, h2), lambda i: (0, 0)),
            pl.BlockSpec((2, h2), lambda i: (0, 0)),
            pl.BlockSpec((h2, out_dim), lambda i: (0, 0)),
            pl.BlockSpec((1, out_dim), lambda i: (0, 0)),
        ],
        out_specs=pl.BlockSpec((tb, out_dim), lambda i: (i, 0)),
        compiler_params=pltpu.CompilerParams(
            dimension_semantics=("parallel",),       # megacore on v7x
            vmem_limit_bytes=32 * 1024 * 1024,       # safe on v5e/v6e/v7x
        ),
    )(x_bf, w1, ln1, w2, ln2, wh, bh2)
    return out[:B]


def _trunc_normal_weight(key, in_dim, out_dim):
    # truncated_normal_init_: trunc_normal_(std=1, a=-2, b=2) * sqrt(1 / fan_in)
    std = math.sqrt(1.0 / in_dim)
    # stored as (in, out) so the kernel computes x @ W (matches nn.Linear).
    return jax.random.truncated_normal(key, -2.0, 2.0, (in_dim, out_dim),
                                       jnp.float32) * std


def init_params(key, in_dim, h1, h2, out_dim):
    k1, k2, k3 = jax.random.split(key, 3)
    w1 = _trunc_normal_weight(k1, in_dim, h1)
    g1 = jnp.ones((h1,), jnp.float32)    # LayerNorm weight init -> 1
    b1 = jnp.zeros((h1,), jnp.float32)   # LayerNorm bias init -> 0
    w2 = _trunc_normal_weight(k2, h1, h2)
    g2 = jnp.ones((h2,), jnp.float32)
    b2 = jnp.zeros((h2,), jnp.float32)
    wh = _trunc_normal_weight(k3, h2, out_dim)   # head weight
    bh = jnp.zeros((out_dim,), jnp.float32)      # head bias init -> 0
    return (w1, g1, b1, w2, g2, b2, wh, bh)


def reference_forward(x, params):
    # Pure-JAX reference (torch-style two-pass LayerNorm) for correctness.
    w1, g1, b1, w2, g2, b2, wh, bh = params
    xh = x.astype(jnp.bfloat16).astype(jnp.float32)  # same streaming quantization

    def ln(h, g, b):
        mu = jnp.mean(h, axis=-1, keepdims=True)
        xmu = h - mu
        var = jnp.mean(xmu * xmu, axis=-1, keepdims=True)
        return xmu * jax.lax.rsqrt(var + _LN_EPS) * g + b

    h = xh @ w1
    h = ln(h, g1, b1)
    h = h * jax.nn.sigmoid(h)
    h = h @ w2
    h = ln(h, g2, b2)
    h = h * jax.nn.sigmoid(h)
    return h @ wh + bh


if __name__ == "__main__":
    B, IN_DIM, H1, H2, OUT_DIM = 8, 32, 64, 64, 32

    key = jax.random.PRNGKey(0)
    kx, kp = jax.random.split(key)
    x = jax.random.normal(kx, (B, IN_DIM), jnp.float32)
    params = init_params(kp, IN_DIM, H1, H2, OUT_DIM)

    y = jax.block_until_ready(vector_mlp_forward(x, params))
    y_ref = reference_forward(x, params)

    assert y.shape == (B, OUT_DIM), y.shape
    assert jnp.allclose(y, y_ref, atol=2e-3, rtol=2e-3), (y, y_ref)

    # TODO(synk): VectorMLP.loss() (l1/l2/cosine/huber objectives) is a
    # training-time method and is not part of forward(); not implemented.
    print("KERNEL_OK")
</pallas_src>

<mosaic_0001>
module attributes {stable_mosaic.version = 11 : i64} {
  func.func @vector_mlp_kernel(%arg0: i32, %arg1: memref<256x32xbf16, #tpu.memory_space<vmem>>, %arg2: memref<32x64xf32, #tpu.memory_space<vmem>>, %arg3: memref<2x64xf32, #tpu.memory_space<vmem>>, %arg4: memref<64x64xf32, #tpu.memory_space<vmem>>, %arg5: memref<2x64xf32, #tpu.memory_space<vmem>>, %arg6: memref<64x32xf32, #tpu.memory_space<vmem>>, %arg7: memref<1x32xf32, #tpu.memory_space<vmem>>, %arg8: memref<256x32xf32, #tpu.memory_space<vmem>>) attributes {dimension_semantics = [#tpu.dimension_semantics<parallel>], iteration_bounds = array<i64: 1>, scalar_prefetch = 0 : i64, scratch_operands = 0 : i64, tpu.core_type = #tpu.core_type<tc>, window_params = [{transform_indices = @transform_0, window_bounds = array<i64: 256, 32>}, {pipeline_mode = #tpu.pipeline_mode<synchronous>, transform_indices = @transform_1, window_bounds = array<i64: 32, 64>}, {pipeline_mode = #tpu.pipeline_mode<synchronous>, transform_indices = @transform_2, window_bounds = array<i64: 2, 64>}, {pipeline_mode = #tpu.pipeline_mode<synchronous>, transform_indices = @transform_3, window_bounds = array<i64: 64, 64>}, {pipeline_mode = #tpu.pipeline_mode<synchronous>, transform_indices = @transform_4, window_bounds = array<i64: 2, 64>}, {pipeline_mode = #tpu.pipeline_mode<synchronous>, transform_indices = @transform_5, window_bounds = array<i64: 64, 32>}, {pipeline_mode = #tpu.pipeline_mode<synchronous>, transform_indices = @transform_6, window_bounds = array<i64: 1, 32>}, {transform_indices = @transform_7, window_bounds = array<i64: 256, 32>}]} {
    %c0 = arith.constant 0 : index
    %c0_0 = arith.constant 0 : index
    %0 = vector.load %arg1[%c0, %c0_0] : memref<256x32xbf16, #tpu.memory_space<vmem>>, vector<256x32xbf16>
    %1 = arith.extf %0 : vector<256x32xbf16> to vector<256x32xf32>
    %c0_1 = arith.constant 0 : index
    %c0_2 = arith.constant 0 : index
    %2 = vector.load %arg2[%c0_1, %c0_2] : memref<32x64xf32, #tpu.memory_space<vmem>>, vector<32x64xf32>
    %cst = arith.constant dense<0.000000e+00> : vector<256x64xf32>
    %3 = tpu.matmul %1, %2, %cst {dimension_numbers = #tpu.dot_dimension_numbers<[1], [0], [0], [1], [0, 0, 1, 1], [], []>} : vector<256x32xf32>, vector<32x64xf32>, vector<256x64xf32> -> vector<256x64xf32>
    %c0_3 = arith.constant 0 : index
    %c0_4 = arith.constant 0 : index
    %4 = vector.load %arg3[%c0_3, %c0_4] : memref<2x64xf32, #tpu.memory_space<vmem>>, vector<1x64xf32>
    %c1 = arith.constant 1 : index
    %c0_5 = arith.constant 0 : index
    %5 = vector.load %arg3[%c1, %c0_5] : memref<2x64xf32, #tpu.memory_space<vmem>>, vector<1x64xf32>
    %cst_6 = arith.constant dense<0.000000e+00> : vector<256xf32>
    %6 = vector.multi_reduction <add>, %3, %cst_6 [1] : vector<256x64xf32> to vector<256xf32>
    %7 = vector.shape_cast %6 : vector<256xf32> to vector<256x1xf32>
    %cst_7 = arith.constant 6.400000e+01 : f32
    %8 = vector.broadcast %cst_7 : f32 to vector<256x1xf32>
    %9 = arith.divf %7, %8 : vector<256x1xf32>
    %10 = arith.mulf %3, %3 : vector<256x64xf32>
    %cst_8 = arith.constant dense<0.000000e+00> : vector<256xf32>
    %11 = vector.multi_reduction <add>, %10, %cst_8 [1] : vector<256x64xf32> to vector<256xf32>
    %12 = vector.shape_cast %11 : vector<256xf32> to vector<256x1xf32>
    %cst_9 = arith.constant 6.400000e+01 : f32
    %13 = vector.broadcast %cst_9 : f32 to vector<256x1xf32>
    %14 = arith.divf %12, %13 : vector<256x1xf32>
    %15 = arith.mulf %9, %9 : vector<256x1xf32>
    %16 = arith.subf %14, %15 : vector<256x1xf32>
    %cst_10 = arith.constant 0.000000e+00 : f32
    %17 = vector.broadcast %cst_10 : f32 to vector<256x1xf32>
    %18 = arith.maximumf %16, %17 : vector<256x1xf32>
    %19 = vector.broadcast %9 : vector<256x1xf32> to vector<256x64xf32>
    %20 = arith.subf %3, %19 : vector<256x64xf32>
    %cst_11 = arith.constant 1.000000e-03 : f32
    %21 = vector.broadcast %cst_11 : f32 to vector<256x1xf32>
    %22 = arith.addf %18, %21 : vector<256x1xf32>
    %23 = math.rsqrt %22 : vector<256x1xf32>
    %24 = vector.broadcast %23 : vector<256x1xf32> to vector<256x64xf32>
    %25 = arith.mulf %20, %24 : vector<256x64xf32>
    %26 = vector.broadcast %4 : vector<1x64xf32> to vector<256x64xf32>
    %27 = arith.mulf %25, %26 : vector<256x64xf32>
    %28 = vector.broadcast %5 : vector<1x64xf32> to vector<256x64xf32>
    %29 = arith.addf %27, %28 : vector<256x64xf32>
    %30 = arith.negf %29 : vector<256x64xf32>
    %31 = math.exp %30 : vector<256x64xf32>
    %cst_12 = arith.constant 1.000000e+00 : f32
    %32 = vector.broadcast %cst_12 : f32 to vector<256x64xf32>
    %33 = arith.addf %32, %31 : vector<256x64xf32>
    %34 = arith.divf %32, %33 : vector<256x64xf32>
    %35 = arith.mulf %29, %34 : vector<256x64xf32>
    %c0_13 = arith.constant 0 : index
    %c0_14 = arith.constant 0 : index
    %36 = vector.load %arg4[%c0_13, %c0_14] : memref<64x64xf32, #tpu.memory_space<vmem>>, vector<64x64xf32>
    %cst_15 = arith.constant dense<0.000000e+00> : vector<256x64xf32>
    %37 = tpu.matmul %35, %36, %cst_15 {dimension_numbers = #tpu.dot_dimension_numbers<[1], [0], [0], [1], [0, 0, 1, 1], [], []>} : vector<256x64xf32>, vector<64x64xf32>, vector<256x64xf32> -> vector<256x64xf32>
    %c0_16 = arith.constant 0 : index
    %c0_17 = arith.constant 0 : index
    %38 = vector.load %arg5[%c0_16, %c0_17] : memref<2x64xf32, #tpu.memory_space<vmem>>, vector<1x64xf32>
    %c1_18 = arith.constant 1 : index
    %c0_19 = arith.constant 0 : index
    %39 = vector.load %arg5[%c1_18, %c0_19] : memref<2x64xf32, #tpu.memory_space<vmem>>, vector<1x64xf32>
    %cst_20 = arith.constant dense<0.000000e+00> : vector<256xf32>
    %40 = vector.multi_reduction <add>, %37, %cst_20 [1] : vector<256x64xf32> to vector<256xf32>
    %41 = vector.shape_cast %40 : vector<256xf32> to vector<256x1xf32>
    %cst_21 = arith.constant 6.400000e+01 : f32
    %42 = vector.broadcast %cst_21 : f32 to vector<256x1xf32>
    %43 = arith.divf %41, %42 : vector<256x1xf32>
    %44 = arith.mulf %37, %37 : vector<256x64xf32>
    %cst_22 = arith.constant dense<0.000000e+00> : vector<256xf32>
    %45 = vector.multi_reduction <add>, %44, %cst_22 [1] : vector<256x64xf32> to vector<256xf32>
    %46 = vector.shape_cast %45 : vector<256xf32> to vector<256x1xf32>
    %cst_23 = arith.constant 6.400000e+01 : f32
    %47 = vector.broadcast %cst_23 : f32 to vector<256x1xf32>
    %48 = arith.divf %46, %47 : vector<256x1xf32>
    %49 = arith.mulf %43, %43 : vector<256x1xf32>
    %50 = arith.subf %48, %49 : vector<256x1xf32>
    %cst_24 = arith.constant 0.000000e+00 : f32
    %51 = vector.broadcast %cst_24 : f32 to vector<256x1xf32>
    %52 = arith.maximumf %50, %51 : vector<256x1xf32>
    %53 = vector.broadcast %43 : vector<256x1xf32> to vector<256x64xf32>
    %54 = arith.subf %37, %53 : vector<256x64xf32>
    %cst_25 = arith.constant 1.000000e-03 : f32
    %55 = vector.broadcast %cst_25 : f32 to vector<256x1xf32>
    %56 = arith.addf %52, %55 : vector<256x1xf32>
    %57 = math.rsqrt %56 : vector<256x1xf32>
    %58 = vector.broadcast %57 : vector<256x1xf32> to vector<256x64xf32>
    %59 = arith.mulf %54, %58 : vector<256x64xf32>
    %60 = vector.broadcast %38 : vector<1x64xf32> to vector<256x64xf32>
    %61 = arith.mulf %59, %60 : vector<256x64xf32>
    %62 = vector.broadcast %39 : vector<1x64xf32> to vector<256x64xf32>
    %63 = arith.addf %61, %62 : vector<256x64xf32>
    %64 = arith.negf %63 : vector<256x64xf32>
    %65 = math.exp %64 : vector<256x64xf32>
    %cst_26 = arith.constant 1.000000e+00 : f32
    %66 = vector.broadcast %cst_26 : f32 to vector<256x64xf32>
    %67 = arith.addf %66, %65 : vector<256x64xf32>
    %68 = arith.divf %66, %67 : vector<256x64xf32>
    %69 = arith.mulf %63, %68 : vector<256x64xf32>
    %c0_27 = arith.constant 0 : index
    %c0_28 = arith.constant 0 : index
    %70 = vector.load %arg6[%c0_27, %c0_28] : memref<64x32xf32, #tpu.memory_space<vmem>>, vector<64x32xf32>
    %cst_29 = arith.constant dense<0.000000e+00> : vector<256x32xf32>
    %71 = tpu.matmul %69, %70, %cst_29 {dimension_numbers = #tpu.dot_dimension_numbers<[1], [0], [0], [1], [0, 0, 1, 1], [], []>} : vector<256x64xf32>, vector<64x32xf32>, vector<256x32xf32> -> vector<256x32xf32>
    %c0_30 = arith.constant 0 : index
    %c0_31 = arith.constant 0 : index
    %72 = vector.load %arg7[%c0_30, %c0_31] : memref<1x32xf32, #tpu.memory_space<vmem>>, vector<1x32xf32>
    %73 = vector.broadcast %72 : vector<1x32xf32> to vector<256x32xf32>
    %74 = arith.addf %71, %73 : vector<256x32xf32>
    %c0_32 = arith.constant 0 : index
    %c0_33 = arith.constant 0 : index
    %75 = vector.load %arg8[%c0_32, %c0_33] : memref<256x32xf32, #tpu.memory_space<vmem>>, vector<256x32xf32>
    tpu.vector_store %arg8[%c0_32, %c0_33], %74 {strides = array<i32>} : memref<256x32xf32, #tpu.memory_space<vmem>>, vector<256x32xf32>,
    return
  }
  func.func @transform_0(%arg0: i32) -> (i32, i32) {
    %c0_i32 = arith.constant 0 : i32
    %c0_i32_0 = arith.constant 0 : i32
    return %arg0, %c0_i32 : i32, i32
  }
  func.func @transform_1(%arg0: i32) -> (i32, i32) {
    %c0_i32 = arith.constant 0 : i32
    %c0_i32_0 = arith.constant 0 : i32
    %c0_i32_1 = arith.constant 0 : i32
    return %c0_i32, %c0_i32_0 : i32, i32
  }
  func.func @transform_2(%arg0: i32) -> (i32, i32) {
    %c0_i32 = arith.constant 0 : i32
    %c0_i32_0 = arith.constant 0 : i32
    %c0_i32_1 = arith.constant 0 : i32
    return %c0_i32, %c0_i32_0 : i32, i32
  }
  func.func @transform_3(%arg0: i32) -> (i32, i32) {
    %c0_i32 = arith.constant 0 : i32
    %c0_i32_0 = arith.constant 0 : i32
    %c0_i32_1 = arith.constant 0 : i32
    return %c0_i32, %c0_i32_0 : i32, i32
  }
  func.func @transform_4(%arg0: i32) -> (i32, i32) {
    %c0_i32 = arith.constant 0 : i32
    %c0_i32_0 = arith.constant 0 : i32
    %c0_i32_1 = arith.constant 0 : i32
    return %c0_i32, %c0_i32_0 : i32, i32
  }
  func.func @transform_5(%arg0: i32) -> (i32, i32) {
    %c0_i32 = arith.constant 0 : i32
    %c0_i32_0 = arith.constant 0 : i32
    %c0_i32_1 = arith.constant 0 : i32
    return %c0_i32, %c0_i32_0 : i32, i32
  }
  func.func @transform_6(%arg0: i32) -> (i32, i32) {
    %c0_i32 = arith.constant 0 : i32
    %c0_i32_0 = arith.constant 0 : i32
    %c0_i32_1 = arith.constant 0 : i32
    return %c0_i32, %c0_i32_0 : i32, i32
  }
  func.func @transform_7(%arg0: i32) -> (i32, i32) {
    %c0_i32 = arith.constant 0 : i32
    %c0_i32_0 = arith.constant 0 : i32
    return %arg0, %c0_i32 : i32, i32
  }
}

</mosaic_0001>

<bundles_post_ra>
// kernel: vector_mlp_forward.1
= control target key start
LH: loop header
LB: loop body
LE: loop exit
PB: predicated region body
PF: predicated region fallthrough
CT: control target
= control target key end

     0   :  { %vm94_vm0 = vcmask 261120   ;;  %vm418_vm1 = vcmask 523264   ;;  %s5351_s1 = inlined_call_operand.vmem [shape: f32[32,64], index: 1, kind: input, shape index: {}]   ;;  %s5352_s0 = inlined_call_operand.vmem [shape: bf16[256,32], index: 0, kind: input, shape index: {}]   ;;  %s5353_s3 = inlined_call_operand.vmem [shape: f32[64,64], index: 3, kind: input, shape index: {}]   ;;  %s5354_s2 = inlined_call_operand.vmem [shape: f32[2,64], index: 2, kind: input, shape index: {}]   ;;  %s5355_s5 = inlined_call_operand.vmem [shape: f32[64,32], index: 5, kind: input, shape index: {}]   ;;  %s5356_s4 = inlined_call_operand.vmem [shape: f32[2,64], index: 4, kind: input, shape index: {}]   ;;  %s5357_s6 = inlined_call_operand.vmem [shape: f32[1,32], index: 6, kind: input, shape index: {}]   ;;  %s5358_s7 = inlined_call_operand.vmem [shape: f32[256,32], index: 7, kind: output, shape index: {}]  }
   0x1   :  { %v90_v0 = vld [vmem:[%s5351_s1] sm:$0xff]  ;;  %v91_v1 = vld [vmem:[%s5351_s1 + $0x8] sm:$0xff]  ;;  %v92_v2 = vld [vmem:[%s5351_s1 + $0x10] sm:$0xff] }
   0x2   :  { %v3283_v3 = vpack.c.bf16 %v91_v1, %v90_v0  ;;  %v93_v4 = vld [vmem:[%s5351_s1 + $0x18] sm:$0xff]  ;;  %v2905_v5 = vld [vmem:[%s5352_s0] sm:$0xff]   ;;  %v2968_v10 = vld [vmem:[%s5352_s0 + $0x8] sm:$0xff]  }
   0x3   :  { %v2975_v6 = vld [vmem:[%s5352_s0 + $0x40] sm:$0xff]   ;;  %v3287_v7 = vpack.c.bf16 %v93_v4, %v92_v2  ;;  %v2906_v8 = vunpack.c.l.bf16 %v2905_v5  ;;  %v2976_v11 = vld [vmem:[%s5352_s0 + $0x48] sm:$0xff]   ;;  %v2907_v12 = vunpack.c.h.bf16 %v2905_v5  ;;  %v2910_v14 = vunpack.c.l.bf16 %v2968_v10  ;;  %v2969_v16 = vld [vmem:[%s5352_s0 + $0x10] sm:$0xff]  }
   0x4   :  { %v2938_v9 = vunpack.c.l.bf16 %v2975_v6  ;;  %3284 = vmatprep.subr.bf16.mxu0 %v3283_v3  ;;  %3323 = vmatprep.subr.bf16.mxu1 %v3283_v3  ;;  %v2939_v13 = vunpack.c.h.bf16 %v2975_v6  ;;  %v2942_v15 = vunpack.c.l.bf16 %v2976_v11  ;;  %v2977_v17 = vld [vmem:[%s5352_s0 + $0x50] sm:$0xff]   ;;  %v2911_v18 = vunpack.c.h.bf16 %v2968_v10  ;;  %v2970_v22 = vld [vmem:[%s5352_s0 + $0x18] sm:$0xff]   ;;  %v2971_v28 = vld [vmem:[%s5352_s0 + $0x20] sm:$0xff]  }
   0x5   :  { %3286 = vmatpush3.bf16.msra.mxu0 %v3283_v3  ;;  %3325 = vmatpush3.bf16.msra.mxu1 %v3283_v3  ;;  %v2943_v19 = vunpack.c.h.bf16 %v2976_v11  ;;  %v2914_v20 = vunpack.c.l.bf16 %v2969_v16  ;;  %v2946_v21 = vunpack.c.l.bf16 %v2977_v17  ;;  %v2978_v23 = vld [vmem:[%s5352_s0 + $0x58] sm:$0xff]   ;;  %v2915_v24 = vunpack.c.h.bf16 %v2969_v16  ;;  %v2979_v29 = vld [vmem:[%s5352_s0 + $0x60] sm:$0xff]   ;;  %v2972_v34 = vld [vmem:[%s5352_s0 + $0x28] sm:$0xff]  }
   0x6   :  { %3288 = vmatprep.subr.bf16.mxu0 %v3287_v7  ;;  %3324 = vmatprep.subr.bf16.mxu1 %v3287_v7  ;;  %v2947_v25 = vunpack.c.h.bf16 %v2977_v17  ;;  %v2918_v26 = vunpack.c.l.bf16 %v2970_v22  ;;  %v2950_v27 = vunpack.c.l.bf16 %v2978_v23  ;;  %v2919_v30 = vunpack.c.h.bf16 %v2970_v22  ;;  %v2980_v35 = vld [vmem:[%s5352_s0 + $0x68] sm:$0xff]   ;;  %v2973_v40 = vld [vmem:[%s5352_s0 + $0x30] sm:$0xff]   ;;  %v2974_v46 = vld [vmem:[%s5352_s0 + $0x38] sm:$0xff]  }
   0x7   :  { %3107 = vmatprep.mubr.msk.f32.mxu0 %vm94_vm0, %v2906_v8  ;;  %3131 = vmatprep.mubr.msk.f32.mxu1 %vm94_vm0, %v2938_v9  ;;  %v2951_v31 = vunpack.c.h.bf16 %v2978_v23  ;;  %v2922_v32 = vunpack.c.l.bf16 %v2971_v28  ;;  %v2954_v33 = vunpack.c.l.bf16 %v2979_v29  ;;  %v2923_v36 = vunpack.c.h.bf16 %v2971_v28  ;;  %v2981_v41 = vld [vmem:[%s5352_s0 + $0x70] sm:$0xff]   ;;  %v2982_v47 = vld [vmem:[%s5352_s0 + $0x78] sm:$0xff]  }
   0x8   :  { %v2955_v37 = vunpack.c.h.bf16 %v2979_v29  ;;  %v2926_v38 = vunpack.c.l.bf16 %v2972_v34  ;;  %v2958_v39 = vunpack.c.l.bf16 %v2980_v35  ;;  %v2927_v42 = vunpack.c.h.bf16 %v2972_v34 }
   0x9   :  { %3290 = vmatpush3.bf16.msra.mxu0 %v3287_v7  ;;  %3326 = vmatpush3.bf16.msra.mxu1 %v3287_v7  ;;  %v2959_v43 = vunpack.c.h.bf16 %v2980_v35  ;;  %v2930_v44 = vunpack.c.l.bf16 %v2973_v40  ;;  %v2962_v45 = vunpack.c.l.bf16 %v2981_v41  ;;  %v2931_v48 = vunpack.c.h.bf16 %v2973_v40 }
   0xa   :  { %v2963_v49 = vunpack.c.h.bf16 %v2981_v41  ;;  %v2934_v50 = vunpack.c.l.bf16 %v2974_v46  ;;  %v2966_v51 = vunpack.c.l.bf16 %v2982_v47  ;;  %v2935_v52 = vunpack.c.h.bf16 %v2974_v46 }
   0xb   :  { %v2967_v53 = vunpack.c.h.bf16 %v2982_v47 }
   0xc   :  { %3108 = vmatmul.mubr.msk.f32.vlgmr.msra.gmra.mrb[0].mxu0 %vm94_vm0, %v2907_v12  ;;  %3132 = vmatmul.mubr.msk.f32.vlgmr.msra.gmra.mrb[0].mxu1 %vm94_vm0, %v2939_v13 }
   0xd   :  { %3110 = vmatprep.mubr.msk.f32.mxu0 %vm94_vm0, %v2910_v14  ;;  %3134 = vmatprep.mubr.msk.f32.mxu1 %vm94_vm0, %v2942_v15 }
  0x10   :  { %3111 = vmatmul.mubr.msk.f32.gmra.mrb[2].mxu0 %vm94_vm0, %v2911_v18  ;;  %3135 = vmatmul.mubr.msk.f32.gmra.mrb[2].mxu1 %vm94_vm0, %v2943_v19 }
  0x11   :  { %3113 = vmatprep.mubr.msk.f32.mxu0 %vm94_vm0, %v2914_v20  ;;  %3137 = vmatprep.mubr.msk.f32.mxu1 %vm94_vm0, %v2946_v21 }
  0x14   :  { %3114 = vmatmul.mubr.msk.f32.gmra.mrb[4].mxu0 %vm94_vm0, %v2915_v24  ;;  %3138 = vmatmul.mubr.msk.f32.gmra.mrb[4].mxu1 %vm94_vm0, %v2947_v25 }
  0x15   :  { %3116 = vmatprep.mubr.msk.f32.mxu0 %vm94_vm0, %v2918_v26  ;;  %3140 = vmatprep.mubr.msk.f32.mxu1 %vm94_vm0, %v2950_v27 }
  0x18   :  { %3117 = vmatmul.mubr.msk.f32.gmra.mrb[6].mxu0 %vm94_vm0, %v2919_v30  ;;  %3141 = vmatmul.mubr.msk.f32.gmra.mrb[6].mxu1 %vm94_vm0, %v2951_v31 }
  0x19   :  { %3119 = vmatprep.mubr.msk.f32.mxu0 %vm94_vm0, %v2922_v32  ;;  %3143 = vmatprep.mubr.msk.f32.mxu1 %vm94_vm0, %v2954_v33 }
  0x1c   :  { %3120 = vmatmul.mubr.msk.f32.gmra.mrb[8].mxu0 %vm94_vm0, %v2923_v36  ;;  %3144 = vmatmul.mubr.msk.f32.gmra.mrb[8].mxu1 %vm94_vm0, %v2955_v37 }
  0x1d   :  { %3122 = vmatprep.mubr.msk.f32.mxu0 %vm94_vm0, %v2926_v38  ;;  %3146 = vmatprep.mubr.msk.f32.mxu1 %vm94_vm0, %v2958_v39 }
  0x20   :  { %3123 = vmatmul.mubr.msk.f32.gmra.mrb[10].mxu0 %vm94_vm0, %v2927_v42  ;;  %3147 = vmatmul.mubr.msk.f32.gmra.mrb[10].mxu1 %vm94_vm0, %v2959_v43 }
  0x21   :  { %3125 = vmatprep.mubr.msk.f32.mxu0 %vm94_vm0, %v2930_v44  ;;  %3149 = vmatprep.mubr.msk.f32.mxu1 %vm94_vm0, %v2962_v45 }
  0x24   :  { %3126 = vmatmul.mubr.msk.f32.gmra.mrb[12].mxu0 %vm94_vm0, %v2931_v48  ;;  %3150 = vmatmul.mubr.msk.f32.gmra.mrb[12].mxu1 %vm94_vm0, %v2963_v49 }
  0x25   :  { %3128 = vmatprep.mubr.msk.f32.mxu0 %vm94_vm0, %v2934_v50  ;;  %3152 = vmatprep.mubr.msk.f32.mxu1 %vm94_vm0, %v2966_v51 }
  0x28   :  { %3129 = vmatmul.mubr.msk.f32.gmra.mrb[14].mxu0 %vm94_vm0, %v2935_v52  ;;  %3153 = vmatmul.mubr.msk.f32.gmra.mrb[14].mxu1 %vm94_vm0, %v2967_v53 }
  0xdf   :  { %v3847_v54 = vpop.f32.mrb[0].mxu0  ;;  %v3849_v55 = vpop.f32.mrb[0].mxu1 }
  0xe0   :  { %v3851_v56 = vpop.f32.mrb[1].mxu0  ;;  %v3853_v57 = vpop.f32.mrb[1].mxu1  ;;  %v470_v58 = vsel %vm418_vm1, %v3849_v55, 0.0  ;;  %v422_v59 = vsel %vm418_vm1, %v3847_v54, 0.0  ;;  %v549_v60 = vmul.f32 %v3847_v54, %v3847_v54  ;;  %v565_v1 = vmul.f32 %v3849_v55, %v3849_v55 }
  0xe1   :  { %471 = vadd.xlane.f32.xlu1 %v470_v58  ;;  %423 = vadd.xlane.f32.xlu0 %v422_v59  ;;  %v419_v0 = vsel %vm418_vm1, %v3851_v56, 0.0  ;;  %v467_v7 = vsel %vm418_vm1, %v3853_v57, 0.0  ;;  %v548_v8 = vmul.f32 %v3851_v56, %v3851_v56  ;;  %v564_v9 = vmul.f32 %v3853_v57, %v3853_v57 }
  0xe2   :  { %v583_v63 = vsel %vm418_vm1, %v549_v60, 0.0  ;;  %v631_v6 = vsel %vm418_vm1, %v565_v1, 0.0 }
  0xe3   :  { %v3861_v61 = vpop.f32.mrb[2].mxu0  ;;  %v3863_v62 = vpop.f32.mrb[2].mxu1  ;;  %v580_v14 = vsel %vm418_vm1, %v548_v8, 0.0  ;;  %v628_v15 = vsel %vm418_vm1, %v564_v9, 0.0 }
  0xe4   :  { %v3870_v2 = vpop.f32.mrb[3].mxu0  ;;  %v3872_v3 = vpop.f32.mrb[3].mxu1  ;;  %v428_v18 = vsel %vm418_vm1, %v3861_v61, 0.0  ;;  %v476_v24 = vsel %vm418_vm1, %v3863_v62, 0.0  ;;  %v551_v28 = vmul.f32 %v3861_v61, %v3861_v61  ;;  %v567_v36 = vmul.f32 %v3863_v62, %v3863_v62 }
  0xe5   :  { %584 = vadd.xlane.f32.xlu1 %v583_v63  ;;  %420 = vadd.xlane.f32.xlu0 %v419_v0  ;;  %v425_v19 = vsel %vm418_vm1, %v3870_v2, 0.0  ;;  %v473_v25 = vsel %vm418_vm1, %v3872_v3, 0.0  ;;  %v550_v29 = vmul.f32 %v3870_v2, %v3870_v2  ;;  %v566_v37 = vmul.f32 %v3872_v3, %v3872_v3 }
  0xe6   :  { %v589_v34 = vsel %vm418_vm1, %v551_v28, 0.0  ;;  %v637_v42 = vsel %vm418_vm1, %v567_v36, 0.0 }
  0xe7   :  { %v3874_v4 = vpop.f32.mrb[4].mxu0  ;;  %v3876_v5 = vpop.f32.mrb[4].mxu1  ;;  %v586_v35 = vsel %vm418_vm1, %v550_v29, 0.0  ;;  %v634_v43 = vsel %vm418_vm1, %v566_v37, 0.0 }
  0xe8   :  { %v3885_v10 = vpop.f32.mrb[5].mxu0  ;;  %v3887_v11 = vpop.f32.mrb[5].mxu1  ;;  %v434_v46 = vsel %vm418_vm1, %v3874_v4, 0.0  ;;  %v482_v48 = vsel %vm418_vm1, %v3876_v5, 0.0  ;;  %v553_v50 = vmul.f32 %v3874_v4, %v3874_v4  ;;  %v569_v58 = vmul.f32 %v3876_v5, %v3876_v5 }
  0xe9   :  { %632 = vadd.xlane.f32.xlu1 %v631_v6  ;;  %468 = vadd.xlane.f32.xlu0 %v467_v7  ;;  %v431_v47 = vsel %vm418_vm1, %v3885_v10, 0.0  ;;  %v479_v49 = vsel %vm418_vm1, %v3887_v11, 0.0  ;;  %v552_v51 = vmul.f32 %v3885_v10, %v3885_v10  ;;  %v568_v59 = vmul.f32 %v3887_v11, %v3887_v11 }
  0xea   :  { %v595_v52 = vsel %vm418_vm1, %v553_v50, 0.0  ;;  %v643_v60 = vsel %vm418_vm1, %v569_v58, 0.0 }
  0xeb   :  { %v3889_v12 = vpop.f32.mrb[6].mxu0  ;;  %v3891_v13 = vpop.f32.mrb[6].mxu1  ;;  %v592_v53 = vsel %vm418_vm1, %v552_v51, 0.0  ;;  %v640_v63 = vsel %vm418_vm1, %v568_v59, 0.0 }
  0xec   :  { %v3895_v16 = vpop.f32.mrb[7].mxu0  ;;  %v3897_v17 = vpop.f32.mrb[7].mxu1  ;;  %v440_v0 = vsel %vm418_vm1, %v3889_v12, 0.0  ;;  %v488_v6 = vsel %vm418_vm1, %v3891_v13, 0.0  ;;  %v555_v8 = vmul.f32 %v3889_v12, %v3889_v12 }
  0xed   :  { %581 = vadd.xlane.f32.xlu1 %v580_v14  ;;  %629 = vadd.xlane.f32.xlu0 %v628_v15  ;;  %v437_v1 = vsel %vm418_vm1, %v3895_v16, 0.0  ;;  %v485_v7 = vsel %vm418_vm1, %v3897_v17, 0.0  ;;  %v554_v9 = vmul.f32 %v3895_v16, %v3895_v16 }
  0xee   :  { %v601_v14 = vsel %vm418_vm1, %v555_v8, 0.0 }
  0xef   :  { %v3903_v20 = vpop.f32.mrb[8].mxu0  ;;  %v3905_v21 = vpop.f32.mrb[8].mxu1  ;;  %v598_v15 = vsel %vm418_vm1, %v554_v9, 0.0 }
  0xf0   :  { %v3907_v22 = vpop.f32.mrb[9].mxu0  ;;  %v3909_v23 = vpop.f32.mrb[9].mxu1  ;;  %v446_v28 = vsel %vm418_vm1, %v3903_v20, 0.0  ;;  %v557_v36 = vmul.f32 %v3903_v20, %v3903_v20 }
  0xf1   :  { %429 = vadd.xlane.f32.xlu1 %v428_v18  ;;  %426 = vadd.xlane.f32.xlu0 %v425_v19  ;;  %v571_v18 = vmul.f32 %v3891_v13, %v3891_v13  ;;  %v570_v19 = vmul.f32 %v3897_v17, %v3897_v17  ;;  %v443_v29 = vsel %vm418_vm1, %v3907_v22, 0.0  ;;  %v556_v37 = vmul.f32 %v3907_v22, %v3907_v22 }
  0xf3   :  { %v3915_v26 = vpop.f32.mrb[10].mxu0  ;;  %v3917_v27 = vpop.f32.mrb[10].mxu1 }
  0xf4   :  { %v3923_v30 = vpop.f32.mrb[11].mxu0  ;;  %v3925_v31 = vpop.f32.mrb[11].mxu1  ;;  %v452_v50 = vsel %vm418_vm1, %v3915_v26, 0.0  ;;  %v559_v58 = vmul.f32 %v3915_v26, %v3915_v26 }
  0xf5   :  { %477 = vadd.xlane.f32.xlu1 %v476_v24  ;;  %474 = vadd.xlane.f32.xlu0 %v473_v25  ;;  %v649_v24 = vsel %vm418_vm1, %v571_v18, 0.0  ;;  %v646_v25 = vsel %vm418_vm1, %v570_v19, 0.0  ;;  %v449_v51 = vsel %vm418_vm1, %v3923_v30, 0.0  ;;  %v558_v59 = vmul.f32 %v3923_v30, %v3923_v30 }
  0xf7   :  { %v3927_v32 = vpop.f32.mrb[12].mxu0  ;;  %v3929_v33 = vpop.f32.mrb[12].mxu1 }
  0xf8   :  { %v3937_v38 = vpop.f32.mrb[13].mxu0  ;;  %v3939_v39 = vpop.f32.mrb[13].mxu1  ;;  %v458_v8 = vsel %vm418_vm1, %v3927_v32, 0.0 }
  0xf9   :  { %590 = vadd.xlane.f32.xlu1 %v589_v34  ;;  %587 = vadd.xlane.f32.xlu0 %v586_v35  ;;  %v1228_v34 = vld [vmem:[%s5353_s3] sm:$0xff]  ;;  %v1229_v35 = vld [vmem:[%s5353_s3 + $0x8] sm:$0xff]  ;;  %v455_v9 = vsel %vm418_vm1, %v3937_v38, 0.0 }
  0xfb   :  { %v3941_v40 = vpop.f32.mrb[14].mxu0  ;;  %v3943_v41 = vpop.f32.mrb[14].mxu1 }
  0xfc   :  { %v3947_v44 = vpop.f32.mrb[15].mxu0  ;;  %v3949_v45 = vpop.f32.mrb[15].mxu1 }
  0xfd   :  { %5362 = vst [vmem:[#allocation2_spill] sm:$0xff] %v3949_v45  ;;  %638 = vadd.xlane.f32.xlu1 %v637_v42  ;;  %635 = vadd.xlane.f32.xlu0 %v634_v43  ;;  %v3291_v42 = vpack.c.bf16 %v1229_v35, %v1228_v34  ;;  %v1230_v43 = vld [vmem:[%s5353_s3 + $0x10] sm:$0xff] }
  0xff   :  { %3292 = vmatprep.subr.bf16.mxu1 %v3291_v42 }
 0x100   :  { %3294 = vmatpush3.bf16.msra.mxu1 %v3291_v42  ;;  %v573_v42 = vmul.f32 %v3905_v21, %v3905_v21 }
 0x101   :  { %435 = vadd.xlane.f32.xlu1 %v434_v46  ;;  %432 = vadd.xlane.f32.xlu0 %v431_v47  ;;  %v1231_v46 = vld [vmem:[%s5353_s3 + $0x18] sm:$0xff]  ;;  %v607_v47 = vsel %vm418_vm1, %v557_v36, 0.0  ;;  %v494_v36 = vsel %vm418_vm1, %v3905_v21, 0.0 }
 0x105   :  { %483 = vadd.xlane.f32.xlu1 %v482_v48  ;;  %480 = vadd.xlane.f32.xlu0 %v479_v49  ;;  %v604_v48 = vsel %vm418_vm1, %v556_v37, 0.0  ;;  %v3295_v49 = vpack.c.bf16 %v1231_v46, %v1230_v43  ;;  %v491_v37 = vsel %vm418_vm1, %v3909_v23, 0.0  ;;  %v572_v43 = vmul.f32 %v3909_v23, %v3909_v23 }
 0x106   :  { %v655_v46 = vsel %vm418_vm1, %v573_v42, 0.0 }
 0x107   :  { %3296 = vmatprep.subr.bf16.mxu1 %v3295_v49 }
 0x108   :  { %3298 = vmatpush3.bf16.msra.mxu1 %v3295_v49  ;;  %v497_v49 = vsel %vm418_vm1, %v3925_v31, 0.0 }
 0x109   :  { %596 = vadd.xlane.f32.xlu1 %v595_v52  ;;  %593 = vadd.xlane.f32.xlu0 %v592_v53  ;;  %v1232_v52 = vld [vmem:[%s5353_s3 + $0x20] sm:$0xff]  ;;  %v1233_v53 = vld [vmem:[%s5353_s3 + $0x28] sm:$0xff] }
 0x10d   :  { %644 = vadd.xlane.f32.xlu1 %v643_v60  ;;  %641 = vadd.xlane.f32.xlu0 %v640_v63  ;;  %v3299_v60 = vpack.c.bf16 %v1233_v53, %v1232_v52  ;;  %v1234_v63 = vld [vmem:[%s5353_s3 + $0x30] sm:$0xff] }
 0x10f   :  { %3300 = vmatprep.subr.bf16.mxu1 %v3299_v60 }
 0x110   :  { %3302 = vmatpush3.bf16.msra.mxu1 %v3299_v60  ;;  %v577_v60 = vmul.f32 %v3929_v33, %v3929_v33 }
 0x111   :  { %441 = vadd.xlane.f32.xlu1 %v440_v0  ;;  %438 = vadd.xlane.f32.xlu0 %v437_v1  ;;  %v1235_v0 = vld [vmem:[%s5353_s3 + $0x38] sm:$0xff]  ;;  %v613_v1 = vsel %vm418_vm1, %v559_v58, 0.0  ;;  %v506_v58 = vsel %vm418_vm1, %v3929_v33, 0.0 }
 0x115   :  { %489 = vadd.xlane.f32.xlu1 %v488_v6  ;;  %486 = vadd.xlane.f32.xlu0 %v485_v7  ;;  %v610_v6 = vsel %vm418_vm1, %v558_v59, 0.0  ;;  %v3303_v7 = vpack.c.bf16 %v1235_v0, %v1234_v63  ;;  %v503_v59 = vsel %vm418_vm1, %v3939_v39, 0.0  ;;  %v576_v63 = vmul.f32 %v3939_v39, %v3939_v39 }
 0x116   :  { %v667_v0 = vsel %vm418_vm1, %v577_v60, 0.0 }
 0x117   :  { %3304 = vmatprep.subr.bf16.mxu1 %v3303_v7 }
 0x118   :  { %3306 = vmatpush3.bf16.msra.mxu1 %v3303_v7  ;;  %v509_v7 = vsel %vm418_vm1, %v3949_v45, 0.0 }
 0x119   :  { %602 = vadd.xlane.f32.xlu1 %v601_v14  ;;  %599 = vadd.xlane.f32.xlu0 %v598_v15  ;;  %v561_v14 = vmul.f32 %v3927_v32, %v3927_v32  ;;  %v560_v15 = vmul.f32 %v3937_v38, %v3937_v38 }
 0x11b   :  { %v619_v18 = vsel %vm418_vm1, %v561_v14, 0.0  ;;  %v616_v19 = vsel %vm418_vm1, %v560_v15, 0.0 }
 0x11d   :  { %650 = vadd.xlane.f32.xlu1 %v649_v24  ;;  %647 = vadd.xlane.f32.xlu0 %v646_v25  ;;  %v464_v24 = vsel %vm418_vm1, %v3941_v40, 0.0  ;;  %v461_v25 = vsel %vm418_vm1, %v3947_v44, 0.0 }
 0x121   :  { %447 = vadd.xlane.f32.xlu1 %v446_v28  ;;  %444 = vadd.xlane.f32.xlu0 %v443_v29  ;;  %v563_v28 = vmul.f32 %v3941_v40, %v3941_v40  ;;  %v562_v29 = vmul.f32 %v3947_v44, %v3947_v44 }
 0x123   :  { %v625_v34 = vsel %vm418_vm1, %v563_v28, 0.0  ;;  %v622_v35 = vsel %vm418_vm1, %v562_v29, 0.0 }
 0x125   :  { %608 = vadd.xlane.f32.xlu1 %v607_v47  ;;  %605 = vadd.xlane.f32.xlu0 %v604_v48  ;;  %v652_v47 = vsel %vm418_vm1, %v572_v43, 0.0  ;;  %v500_v48 = vsel %vm418_vm1, %v3917_v27, 0.0 }
 0x129   :  { %453 = vadd.xlane.f32.xlu1 %v452_v50  ;;  %450 = vadd.xlane.f32.xlu0 %v449_v51  ;;  %v575_v50 = vmul.f32 %v3917_v27, %v3917_v27  ;;  %v574_v51 = vmul.f32 %v3925_v31, %v3925_v31 }
 0x12b   :  { %v661_v52 = vsel %vm418_vm1, %v575_v50, 0.0  ;;  %v658_v53 = vsel %vm418_vm1, %v574_v51, 0.0 }
 0x12d   :  { %614 = vadd.xlane.f32.xlu1 %v613_v1  ;;  %611 = vadd.xlane.f32.xlu0 %v610_v6  ;;  %v664_v1 = vsel %vm418_vm1, %v576_v63, 0.0  ;;  %v512_v6 = vsel %vm418_vm1, %v3943_v41, 0.0 }
 0x131   :  { %459 = vadd.xlane.f32.xlu1 %v458_v8  ;;  %456 = vadd.xlane.f32.xlu0 %v455_v9  ;;  %v579_v8 = vmul.f32 %v3943_v41, %v3943_v41  ;;  %v578_v9 = vmul.f32 %v3949_v45, %v3949_v45 }
 0x133   :  { %v673_v14 = vsel %vm418_vm1, %v579_v8, 0.0  ;;  %v670_v15 = vsel %vm418_vm1, %v578_v9, 0.0 }
 0x135   :  { %620 = vadd.xlane.f32.xlu1 %v619_v18  ;;  %617 = vadd.xlane.f32.xlu0 %v616_v19 }
 0x139   :  { %465 = vadd.xlane.f32.xlu1 %v464_v24  ;;  %462 = vadd.xlane.f32.xlu0 %v461_v25 }
 0x13d   :  { %626 = vadd.xlane.f32.xlu1 %v625_v34  ;;  %623 = vadd.xlane.f32.xlu0 %v622_v35 }
 0x141   :  { %495 = vadd.xlane.f32.xlu1 %v494_v36  ;;  %492 = vadd.xlane.f32.xlu0 %v491_v37 }
 0x145   :  { %656 = vadd.xlane.f32.xlu1 %v655_v46  ;;  %653 = vadd.xlane.f32.xlu0 %v652_v47 }
 0x149   :  { %501 = vadd.xlane.f32.xlu1 %v500_v48  ;;  %498 = vadd.xlane.f32.xlu0 %v497_v49 }
 0x14d   :  { %662 = vadd.xlane.f32.xlu1 %v661_v52  ;;  %659 = vadd.xlane.f32.xlu0 %v658_v53 }
 0x151   :  { %507 = vadd.xlane.f32.xlu1 %v506_v58  ;;  %504 = vadd.xlane.f32.xlu0 %v503_v59 }
 0x155   :  { %668 = vadd.xlane.f32.xlu1 %v667_v0  ;;  %665 = vadd.xlane.f32.xlu0 %v664_v1 }
 0x159   :  { %513 = vadd.xlane.f32.xlu1 %v512_v6  ;;  %510 = vadd.xlane.f32.xlu0 %v509_v7 }
 0x15d   :  { %674 = vadd.xlane.f32.xlu1 %v673_v14  ;;  %671 = vadd.xlane.f32.xlu0 %v670_v15 }
 0x16e   :  { %v472_v18 = vpop.xlane.xlu1 %471  ;;  %v424_v19 = vpop.xlane.xlu0 %423 }
 0x16f   :  { %v517_v24 = vmul.f32 0.015625, %v424_v19  ;;  %v4099_v47 = vmul.f32 0.015625, %v472_v18 }
 0x171   :  { %v709_v29 = vmul.f32 %v517_v24, %v517_v24  ;;  %v725_v60 = vmul.f32 %v4099_v47, %v4099_v47 }
 0x172   :  { %v585_v25 = vpop.xlane.xlu1 %584  ;;  %v421_v28 = vpop.xlane.xlu0 %420 }
 0x173   :  { %v677_v34 = vmul.f32 0.015625, %v585_v25  ;;  %v4095_v36 = vmul.f32 0.015625, %v421_v28 }
 0x175   :  { %v741_v35 = vsub.f32 %v677_v34, %v709_v29  ;;  %v708_v49 = vmul.f32 %v4095_v36, %v4095_v36  ;;  %v805_v29 = vsub.f32 %v3847_v54, %v517_v24  ;;  %v4124_v54 = vld [vmem:[%s5354_s2 + $0x1] ss:$0 sm:$0xff] }
 0x176   :  { %v633_v37 = vpop.xlane.xlu1 %632  ;;  %v469_v42 = vpop.xlane.xlu0 %468 }
 0x177   :  { %v773_v43 = vmax.f32 %v741_v35, 0.0  ;;  %v4097_v46 = vmul.f32 0.015625, %v469_v42  ;;  %v693_v50 = vmul.f32 0.015625, %v633_v37  ;;  %v4115_v37 = vld [vmem:[%s5354_s2] ss:$0 sm:$0xff] }
 0x179   :  { %v837_v48 = vadd.f32 0.001, %v773_v43  ;;  %v724_v53 = vmul.f32 %v4097_v46, %v4097_v46  ;;  %v757_v1 = vsub.f32 %v693_v50, %v725_v60 }
 0x17a   :  { %v582_v51 = vpop.xlane.xlu1 %581  ;;  %v630_v52 = vpop.xlane.xlu0 %629 }
 0x17b   :  { %3327 = vrsqrt.f32 %v837_v48  ;;  %v676_v58 = vmul.f32 0.015625, %v582_v51  ;;  %v692_v59 = vmul.f32 0.015625, %v630_v52  ;;  %v789_v15 = vmax.f32 %v757_v1, 0.0 }
 0x17d   :  { %v740_v63 = vsub.f32 %v676_v58, %v708_v49  ;;  %v756_v0 = vsub.f32 %v692_v59, %v724_v53  ;;  %v853_v43 = vadd.f32 0.001, %v789_v15 }
 0x17e   :  { %v430_v6 = vpop.xlane.xlu1 %429  ;;  %v427_v7 = vpop.xlane.xlu0 %426 }
 0x17f   :  { %v772_v8 = vmax.f32 %v740_v63, 0.0  ;;  %v788_v9 = vmax.f32 %v756_v0, 0.0  ;;  %v4107_v25 = vmul.f32 0.015625, %v430_v6  ;;  %v4109_v28 = vmul.f32 0.015625, %v427_v7 }
 0x180   :  { %v804_v7 = vsub.f32 %v3851_v56, %v4095_v36 }
 0x181   :  { %v836_v14 = vadd.f32 0.001, %v772_v8  ;;  %v852_v34 = vadd.f32 0.001, %v788_v9  ;;  %v711_v50 = vmul.f32 %v4107_v25, %v4107_v25  ;;  %v710_v51 = vmul.f32 %v4109_v28, %v4109_v28 }
 0x182   :  { %v478_v18 = vpop.xlane.xlu1 %477  ;;  %v475_v19 = vpop.xlane.xlu0 %474 }
 0x183   :  { %3329 = vrsqrt.f32 %v836_v14  ;;  %v4132_v8 = vmul.f32 0.015625, %v475_v19 }
 0x184   :  { %3331 = vrsqrt.f32 %v852_v34 }
 0x185   :  { %v3328_v35 = vpop.eup %3327  ;;  %3333 = vrsqrt.f32 %v853_v43  ;;  %v726_v43 = vmul.f32 %v4132_v8, %v4132_v8 }
 0x186   :  { %v901_v42 = vmul.f32 %v3328_v35, %v805_v29  ;;  %v591_v48 = vpop.xlane.xlu1 %590  ;;  %v588_v49 = vpop.xlane.xlu0 %587 }
 0x187   :  { %v679_v52 = vmul.f32 0.015625, %v591_v48  ;;  %v678_v53 = vmul.f32 0.015625, %v588_v49  ;;  %v4135_v49 = vmul.f32 0.015625, %v478_v18  ;;  %v820_v18 = vsub.f32 %v3853_v57, %v4097_v46 }
 0x188   :  { %v937_v24 = vmul.f32 %v4115_v37, %v901_v42 }
 0x189   :  { %v743_v58 = vsub.f32 %v679_v52, %v711_v50  ;;  %v742_v59 = vsub.f32 %v678_v53, %v710_v51 }
 0x18a   :  { %v639_v60 = vpop.xlane.xlu1 %638  ;;  %v636_v63 = vpop.xlane.xlu0 %635  ;;  %v4128_v0 = vadd.f32 %v4124_v54, %v937_v24  ;;  %v727_v24 = vmul.f32 %v4135_v49, %v4135_v49 }
 0x18b   :  { %v775_v1 = vmax.f32 %v743_v58, 0.0  ;;  %v774_v6 = vmax.f32 %v742_v59, 0.0  ;;  %v694_v29 = vmul.f32 0.015625, %v636_v63  ;;  %v695_v36 = vmul.f32 0.015625, %v639_v60 }
 0x18c   :  { %v2774_v48 = vmul.f32 -1.442695, %v4128_v0 }
 0x18d   :  { %v3330_v9 = vpop.eup %3329  ;;  %v839_v14 = vadd.f32 0.001, %v775_v1  ;;  %v838_v15 = vadd.f32 0.001, %v774_v6  ;;  %v758_v50 = vsub.f32 %v694_v29, %v726_v43  ;;  %v759_v1 = vsub.f32 %v695_v36, %v727_v24 }
 0x18e   :  { %v436_v34 = vpop.xlane.xlu1 %435  ;;  %v433_v35 = vpop.xlane.xlu0 %432  ;;  %v900_v42 = vmul.f32 %v3330_v9, %v804_v7  ;;  %v821_v7 = vsub.f32 %v3849_v55, %v4099_v47 }
 0x18f   :  { %3335 = vrsqrt.f32 %v839_v14  ;;  %v3332_v19 = vpop.eup %3331  ;;  %v4147_v58 = vmul.f32 0.015625, %v436_v34  ;;  %v4149_v59 = vmul.f32 0.015625, %v433_v35  ;;  %v790_v9 = vmax.f32 %v758_v50, 0.0 }
 0x190   :  { %3337 = vrsqrt.f32 %v838_v15  ;;  %v936_v56 = vmul.f32 %v4115_v37, %v900_v42  ;;  %v3334_v63 = vpop.eup %3333  ;;  %v916_v6 = vmul.f32 %v3332_v19, %v820_v18  ;;  %v807_v35 = vsub.f32 %v3861_v61, %v4107_v25 }
 0x191   :  { %3339 = vpow2.f32 %v2774_v48  ;;  %v713_v57 = vmul.f32 %v4147_v58, %v4147_v58  ;;  %v712_v46 = vmul.f32 %v4149_v59, %v4149_v59  ;;  %v917_v42 = vmul.f32 %v3334_v63, %v821_v7 }
 0x192   :  { %v484_v51 = vpop.xlane.xlu1 %483  ;;  %v481_v52 = vpop.xlane.xlu0 %480  ;;  %v4141_v53 = vadd.f32 %v4124_v54, %v936_v56  ;;  %v791_v43 = vmax.f32 %v759_v1, 0.0  ;;  %v952_v47 = vmul.f32 %v4115_v37, %v916_v6  ;;  %v806_v19 = vsub.f32 %v3870_v2, %v4109_v28 }
 0x193   :  { %v854_v50 = vadd.f32 0.001, %v790_v9  ;;  %v4163_v18 = vmul.f32 0.015625, %v484_v51  ;;  %v953_v6 = vmul.f32 %v4115_v37, %v917_v42 }
 0x194   :  { %v2773_v60 = vmul.f32 -1.442695, %v4141_v53  ;;  %v4170_v28 = vadd.f32 %v4124_v54, %v952_v47 }
 0x195   :  { %v729_v51 = vmul.f32 %v4163_v18, %v4163_v18 }
 0x196   :  { %v597_v14 = vpop.xlane.xlu1 %596  ;;  %v594_v15 = vpop.xlane.xlu0 %593  ;;  %3341 = vpow2.f32 %v2773_v60  ;;  %5363 = vst [vmem:[#allocation3_spill] sm:$0xff] %v4170_v28 }
 0x197   :  { %v681_v29 = vmul.f32 0.015625, %v597_v14  ;;  %v680_v34 = vmul.f32 0.015625, %v594_v15  ;;  %v4165_v15 = vmul.f32 0.015625, %v481_v52  ;;  %3343 = vrsqrt.f32 %v854_v50 }
 0x199   :  { %v3336_v48 = vpop.eup %3335  ;;  %v745_v56 = vsub.f32 %v681_v29, %v713_v57  ;;  %v744_v55 = vsub.f32 %v680_v34, %v712_v46  ;;  %v855_v46 = vadd.f32 0.001, %v791_v43 }
 0x19a   :  { %v3338_v36 = vpop.eup %3337  ;;  %v645_v24 = vpop.xlane.xlu1 %644  ;;  %v903_v14 = vmul.f32 %v3336_v48, %v807_v35  ;;  %v728_v48 = vmul.f32 %v4165_v15, %v4165_v15 }
 0x19b   :  { %v642_v60 = vpop.xlane.xlu0 %641  ;;  %v777_v61 = vmax.f32 %v745_v56, 0.0  ;;  %v776_v25 = vmax.f32 %v744_v55, 0.0  ;;  %v3340_v63 = vpop.eup %3339  ;;  %v697_v1 = vmul.f32 0.015625, %v645_v24  ;;  %v902_v7 = vmul.f32 %v3338_v36, %v806_v19 }
 0x19c   :  { %v939_v57 = vmul.f32 %v4115_v37, %v903_v14  ;;  %v696_v52 = vmul.f32 0.015625, %v642_v60  ;;  %v1101_v42 = vadd.f32 1.0, %v3340_v63  ;;  %v2789_v36 = vmul.f32 -1.442695, %v4170_v28 }
 0x19d   :  { %v841_v29 = vadd.f32 0.001, %v777_v61  ;;  %v840_v2 = vadd.f32 0.001, %v776_v25  ;;  %v938_v35 = vmul.f32 %v4115_v37, %v902_v7  ;;  %v761_v56 = vsub.f32 %v697_v1, %v729_v51 }
 0x19e   :  { %v442_v9 = vpop.xlane.xlu1 %441  ;;  %v4181_v47 = vadd.f32 %v4124_v54, %v939_v57  ;;  %v4185_v19 = vadd.f32 %v4124_v54, %v953_v6  ;;  %v760_v50 = vsub.f32 %v696_v52, %v728_v48 }
 0x19f   :  { %v439_v34 = vpop.xlane.xlu0 %438  ;;  %3345 = vrsqrt.f32 %v841_v29  ;;  %v4178_v55 = vadd.f32 %v4124_v54, %v938_v35  ;;  %v4187_v24 = vmul.f32 0.015625, %v442_v9  ;;  %v793_v1 = vmax.f32 %v761_v56, 0.0 }
 0x1a0   :  { %v3342_v43 = vpop.eup %3341  ;;  %3347 = vrsqrt.f32 %v840_v2  ;;  %5364 = vst [vmem:[#allocation4_spill] sm:$0xff] %v4185_v19  ;;  %v4189_v25 = vmul.f32 0.015625, %v439_v34  ;;  %v2776_v7 = vmul.f32 -1.442695, %v4181_v47  ;;  %v792_v57 = vmax.f32 %v760_v50, 0.0 }
 0x1a1   :  { %3349 = vrsqrt.f32 %v855_v46  ;;  %v1100_v61 = vadd.f32 1.0, %v3342_v43  ;;  %v2775_v63 = vmul.f32 -1.442695, %v4178_v55  ;;  %v715_v6 = vmul.f32 %v4187_v24, %v4187_v24  ;;  %v3344_v34 = vpop.eup %3343 }
 0x1a2   :  { %v490_v60 = vpop.xlane.xlu1 %489  ;;  %3351 = vrcp.f32 %v1101_v42  ;;  %v2790_v2 = vmul.f32 -1.442695, %v4185_v19  ;;  %v714_v51 = vmul.f32 %v4189_v25, %v4189_v25  ;;  %v809_v35 = vsub.f32 %v3874_v4, %v4147_v58 }
 0x1a3   :  { %v487_v14 = vpop.xlane.xlu0 %486  ;;  %3353 = vpow2.f32 %v2789_v36  ;;  %v857_v48 = vadd.f32 0.001, %v793_v1  ;;  %v822_v43 = vsub.f32 %v3872_v3, %v4132_v8  ;;  %v856_v19 = vadd.f32 0.001, %v792_v57 }
 0x1a4   :  { %3355 = vrcp.f32 %v1100_v61  ;;  %v808_v61 = vsub.f32 %v3885_v10, %v4149_v59  ;;  %v823_v1 = vsub.f32 %v3863_v62, %v4135_v49  ;;  %v4206_v8 = vmul.f32 0.015625, %v490_v60 }
 0x1a5   :  { %3357 = vpow2.f32 %v2775_v63  ;;  %v918_v4 = vmul.f32 %v3344_v34, %v822_v43 }
 0x1a6   :  { %v603_v46 = vpop.xlane.xlu1 %602  ;;  %3359 = vpow2.f32 %v2776_v7  ;;  %v4208_v7 = vmul.f32 0.015625, %v487_v14 }
 0x1a7   :  { %v600_v29 = vpop.xlane.xlu0 %599  ;;  %v683_v52 = vmul.f32 0.015625, %v603_v46  ;;  %3361 = vpow2.f32 %v2790_v2  ;;  %v954_v62 = vmul.f32 %v4115_v37, %v918_v4 }
 0x1a8   :  { %v682_v9 = vmul.f32 0.015625, %v600_v29  ;;  %3363 = vrsqrt.f32 %v857_v48  ;;  %v730_v48 = vmul.f32 %v4208_v7, %v4208_v7 }
 0x1a9   :  { %v3346_v42 = vpop.eup %3345  ;;  %v747_v56 = vsub.f32 %v683_v52, %v715_v6  ;;  %3365 = vrsqrt.f32 %v856_v19 }
 0x1aa   :  { %v746_v36 = vsub.f32 %v682_v9, %v714_v51  ;;  %v3348_v50 = vpop.eup %3347  ;;  %v651_v46 = vpop.xlane.xlu1 %650  ;;  %v905_v63 = vmul.f32 %v3346_v42, %v809_v35  ;;  %v731_v35 = vmul.f32 %v4206_v8, %v4206_v8 }
 0x1ab   :  { %v648_v29 = vpop.xlane.xlu0 %647  ;;  %v779_v28 = vmax.f32 %v747_v56, 0.0  ;;  %v3350_v58 = vpop.eup %3349  ;;  %v904_v3 = vmul.f32 %v3348_v50, %v808_v61  ;;  %v699_v14 = vmul.f32 0.015625, %v651_v46 }
 0x1ac   :  { %v778_v45 = vmax.f32 %v746_v36, 0.0  ;;  %v3352_v59 = vpop.eup %3351  ;;  %v941_v2 = vmul.f32 %v4115_v37, %v905_v63  ;;  %v919_v49 = vmul.f32 %v3350_v58, %v823_v1  ;;  %v698_v42 = vmul.f32 0.015625, %v648_v29 }
 0x1ad   :  { %v843_v6 = vadd.f32 0.001, %v779_v28  ;;  %v940_v52 = vmul.f32 %v4115_v37, %v904_v3  ;;  %v3354_v9 = vpop.eup %3353  ;;  %v1197_v43 = vmul.f32 %v3352_v59, %v4128_v0 }
 0x1ae   :  { %v842_v10 = vadd.f32 0.001, %v778_v45  ;;  %v448_v57 = vpop.xlane.xlu1 %447  ;;  %v3356_v60 = vpop.eup %3355  ;;  %v4229_v4 = vadd.f32 %v4124_v54, %v941_v2 }
 0x1af   :  { %v445_v51 = vpop.xlane.xlu0 %444  ;;  %3367 = vrsqrt.f32 %v843_v6  ;;  %v4212_v34 = vmul.f32 0.015625, %v448_v57  ;;  %v4218_v45 = vadd.f32 %v4124_v54, %v940_v52  ;;  %v3358_v19 = vpop.eup %3357  ;;  %v1196_v50 = vmul.f32 %v3356_v60, %v4141_v53 }
 0x1b0   :  { %3369 = vrsqrt.f32 %v842_v10  ;;  %v4215_v28 = vmul.f32 0.015625, %v445_v51  ;;  %v3360_v56 = vpop.eup %3359  ;;  %v1102_v63 = vadd.f32 1.0, %v3358_v19  ;;  %v763_v6 = vsub.f32 %v699_v14, %v731_v35 }
 0x1b1   :  { %v717_v36 = vmul.f32 %v4212_v34, %v4212_v34  ;;  %v1103_v29 = vadd.f32 1.0, %v3360_v56  ;;  %3171 = vmatprep.mubr.msk.f32.mxu1 %vm418_vm1, %v1196_v50  ;;  %v2777_v0 = vmul.f32 -1.442695, %v4218_v45  ;;  %v1116_v10 = vadd.f32 1.0, %v3354_v9  ;;  %v4238_v59 = vpop.eup %3361 }
 0x1b2   :  { %v609_v61 = vpop.xlane.xlu1 %608  ;;  %v716_v58 = vmul.f32 %v4215_v28, %v4215_v28  ;;  %v4236_v53 = vadd.f32 %v4124_v54, %v954_v62  ;;  %v762_v57 = vsub.f32 %v698_v42, %v730_v48  ;;  %3172 = vmatmul.mubr.msk.f32.vlgmr.msra.gmra.mrb[16].mxu1 %vm418_vm1, %v1197_v43  ;;  %3371 = vrcp.f32 %v1102_v63  ;;  %v4241_v2 = vpop.eup %3363 }
 0x1b3   :  { %v606_v46 = vpop.xlane.xlu0 %605  ;;  %v685_v1 = vmul.f32 0.015625, %v609_v61  ;;  %v811_v60 = vsub.f32 %v3889_v12, %v4187_v24  ;;  %v810_v14 = vsub.f32 %v3895_v16, %v4189_v25  ;;  %3373 = vrcp.f32 %v1103_v29  ;;  %v3366_v56 = vpop.eup %3365 }
 0x1b4   :  { %v684_v3 = vmul.f32 0.015625, %v606_v46  ;;  %v2778_v62 = vmul.f32 -1.442695, %v4229_v4  ;;  %3375 = vpow2.f32 %v2777_v0  ;;  %v2791_v50 = vmul.f32 -1.442695, %v4236_v53 }
 0x1b5   :  { %v749_v51 = vsub.f32 %v685_v1, %v717_v36  ;;  %v795_v36 = vmax.f32 %v763_v6, 0.0  ;;  %v955_v12 = vmul.f32 %v4115_v37, %v919_v49  ;;  %v794_v16 = vmax.f32 %v762_v57, 0.0 }
 0x1b6   :  { %v748_v52 = vsub.f32 %v684_v3, %v716_v58  ;;  %v454_v9 = vpop.xlane.xlu1 %453  ;;  %3377 = vrcp.f32 %v1116_v10  ;;  %v825_v57 = vsub.f32 %v3876_v5, %v4163_v18  ;;  %v824_v10 = vsub.f32 %v3887_v11, %v4165_v15 }
 0x1b7   :  { %v451_v19 = vpop.xlane.xlu0 %450  ;;  %v781_v35 = vmax.f32 %v749_v51, 0.0  ;;  %v4248_v42 = vmul.f32 0.015625, %v454_v9  ;;  %3379 = vpow2.f32 %v2778_v62  ;;  %v859_v51 = vadd.f32 0.001, %v795_v36 }
 0x1b8   :  { %v780_v48 = vmax.f32 %v748_v52, 0.0  ;;  %v4250_v43 = vmul.f32 0.015625, %v451_v19  ;;  %v858_v52 = vadd.f32 0.001, %v794_v16  ;;  %v4267_v5 = vadd.f32 %v4124_v54, %v955_v12 }
 0x1b9   :  { %v3368_v24 = vpop.eup %3367  ;;  %v845_v25 = vadd.f32 0.001, %v781_v35  ;;  %v719_v63 = vmul.f32 %v4248_v42, %v4248_v42 }
 0x1ba   :  { %v844_v61 = vadd.f32 0.001, %v780_v48  ;;  %v3370_v46 = vpop.eup %3369  ;;  %v718_v58 = vmul.f32 %v4250_v43, %v4250_v43  ;;  %v615_v1 = vpop.xlane.xlu1 %614  ;;  %v907_v29 = vmul.f32 %v3368_v24, %v811_v60  ;;  %v827_v60 = vsub.f32 %v3891_v13, %v4206_v8 }
 0x1bb   :  { %v612_v3 = vpop.xlane.xlu0 %611  ;;  %3381 = vrsqrt.f32 %v845_v25  ;;  %v687_v6 = vmul.f32 0.015625, %v615_v1  ;;  %v906_v49 = vmul.f32 %v3370_v46, %v810_v14  ;;  %v920_v46 = vmul.f32 %v3366_v56, %v824_v10 }
 0x1bc   :  { %v686_v0 = vmul.f32 0.015625, %v612_v3  ;;  %3383 = vrsqrt.f32 %v844_v61  ;;  %v943_v14 = vmul.f32 %v4115_v37, %v907_v29  ;;  %v3372_v18 = vpop.eup %3371 }
 0x1bd   :  { %v751_v9 = vsub.f32 %v687_v6, %v719_v63  ;;  %v942_v35 = vmul.f32 %v4115_v37, %v906_v49  ;;  %3385 = vpow2.f32 %v2791_v50  ;;  %v3374_v16 = vpop.eup %3373  ;;  %v1198_v25 = vmul.f32 %v3372_v18, %v4178_v55 }
 0x1be   :  { %v750_v19 = vsub.f32 %v686_v0, %v718_v58  ;;  %v460_v62 = vpop.xlane.xlu1 %459  ;;  %3387 = vrsqrt.f32 %v859_v51  ;;  %v1199_v12 = vmul.f32 %v3374_v16, %v4181_v47  ;;  %v3376_v58 = vpop.eup %3375  ;;  %v4285_v56 = vadd.f32 %v4124_v54, %v943_v14 }
 0x1bf   :  { %v457_v48 = vpop.xlane.xlu0 %456  ;;  %v783_v11 = vmax.f32 %v751_v9, 0.0  ;;  %v4269_v36 = vmul.f32 0.015625, %v460_v62  ;;  %v4275_v61 = vadd.f32 %v4124_v54, %v942_v35  ;;  %3389 = vrsqrt.f32 %v858_v52  ;;  %3174 = vmatprep.mubr.msk.f32.mxu1 %vm418_vm1, %v1198_v25 }
 0x1c0   :  { %v782_v15 = vmax.f32 %v750_v19, 0.0  ;;  %v4271_v24 = vmul.f32 0.015625, %v457_v48  ;;  %v4287_v0 = vpop.eup %3377  ;;  %3175 = vmatmul.mubr.msk.f32.gmra.mrb[18].mxu1 %vm418_vm1, %v1199_v12  ;;  %v1104_v10 = vadd.f32 1.0, %v3376_v58  ;;  %v813_v52 = vsub.f32 %v3903_v20, %v4212_v34 }
 0x1c1   :  { %v847_v50 = vadd.f32 0.001, %v783_v11  ;;  %v721_v1 = vmul.f32 %v4269_v36, %v4269_v36  ;;  %v2779_v6 = vmul.f32 -1.442695, %v4275_v61  ;;  %v3380_v51 = vpop.eup %3379  ;;  %v956_v9 = vmul.f32 %v4115_v37, %v920_v46 }
 0x1c2   :  { %v846_v63 = vadd.f32 0.001, %v782_v15  ;;  %v720_v3 = vmul.f32 %v4271_v24, %v4271_v24  ;;  %v621_v29 = vpop.xlane.xlu1 %620  ;;  %v921_v19 = vmul.f32 %v4241_v2, %v825_v57  ;;  %v1105_v14 = vadd.f32 1.0, %v3380_v51 }
 0x1c3   :  { %v618_v55 = vpop.xlane.xlu0 %617  ;;  %3391 = vrsqrt.f32 %v847_v50  ;;  %v689_v47 = vmul.f32 0.015625, %v621_v29  ;;  %v812_v11 = vsub.f32 %v3907_v22, %v4215_v28  ;;  %v2780_v25 = vmul.f32 -1.442695, %v4285_v56 }
 0x1c4   :  { %v688_v49 = vmul.f32 0.015625, %v618_v55  ;;  %3393 = vrsqrt.f32 %v846_v63  ;;  %v2792_v22 = vmul.f32 -1.442695, %v4267_v5  ;;  %v817_v8 = vsub.f32 %v3927_v32, %v4269_v36 }
 0x1c5   :  { %v3382_v35 = vpop.eup %3381  ;;  %v753_v62 = vsub.f32 %v689_v47, %v721_v1  ;;  %3395 = vrcp.f32 %v1104_v10  ;;  %v4306_v1 = vadd.f32 %v4124_v54, %v956_v9 }
 0x1c6   :  { %v752_v48 = vsub.f32 %v688_v49, %v720_v3  ;;  %v3384_v18 = vpop.eup %3383  ;;  %v466_v15 = vpop.xlane.xlu1 %465  ;;  %3397 = vpow2.f32 %v2779_v6  ;;  %v909_v20 = vmul.f32 %v3382_v35, %v813_v52  ;;  %v957_v3 = vmul.f32 %v4115_v37, %v921_v19 }
 0x1c7   :  { %v463_v16 = vpop.xlane.xlu0 %462  ;;  %v785_v34 = vmax.f32 %v753_v62, 0.0  ;;  %v4297_v46 = vmul.f32 0.015625, %v466_v15  ;;  %v4301_v57 = vpop.eup %3385  ;;  %3399 = vrcp.f32 %v1105_v14  ;;  %v908_v63 = vmul.f32 %v3384_v18, %v812_v11 }
 0x1c8   :  { %v784_v50 = vmax.f32 %v752_v48, 0.0  ;;  %v4299_v2 = vmul.f32 0.015625, %v463_v16  ;;  %v945_v12 = vmul.f32 %v4115_v37, %v909_v20  ;;  %v3388_v29 = vpop.eup %3387  ;;  %3401 = vpow2.f32 %v2780_v25 }
 0x1c9   :  { %v849_v28 = vadd.f32 0.001, %v785_v34  ;;  %v723_v55 = vmul.f32 %v4297_v46, %v4297_v46  ;;  %v944_v10 = vmul.f32 %v4115_v37, %v908_v63  ;;  %v3390_v51 = vpop.eup %3389  ;;  %v826_v19 = vsub.f32 %v3897_v17, %v4208_v7 }
 0x1ca   :  { %v848_v58 = vadd.f32 0.001, %v784_v50  ;;  %v722_v6 = vmul.f32 %v4299_v2, %v4299_v2  ;;  %v627_v47 = vpop.xlane.xlu1 %626  ;;  %v4315_v9 = vadd.f32 %v4124_v54, %v945_v12  ;;  %v815_v62 = vsub.f32 %v3915_v26, %v4248_v42 }
 0x1cb   :  { %v624_v49 = vpop.xlane.xlu0 %623  ;;  %3403 = vrsqrt.f32 %v849_v28  ;;  %v691_v52 = vmul.f32 0.015625, %v627_v47  ;;  %v4322_v48 = vadd.f32 %v4124_v54, %v944_v10  ;;  %v4325_v15 = vadd.f32 %v4124_v54, %v957_v3 }
 0x1cc   :  { %v690_v35 = vmul.f32 0.015625, %v624_v49  ;;  %3405 = vrsqrt.f32 %v848_v58  ;;  %v814_v25 = vsub.f32 %v3923_v30, %v4250_v43  ;;  %v2782_v26 = vmul.f32 -1.442695, %v4315_v9 }
 0x1cd   :  { %v3392_v14 = vpop.eup %3391  ;;  %v755_v18 = vsub.f32 %v691_v52, %v723_v55  ;;  %3407 = vpow2.f32 %v2792_v22  ;;  %v2781_v7 = vmul.f32 -1.442695, %v4322_v48  ;;  %v2793_v22 = vmul.f32 -1.442695, %v4306_v1 }
 0x1ce   :  { %v754_v11 = vsub.f32 %v690_v35, %v722_v6  ;;  %v3394_v16 = vpop.eup %3393  ;;  %v496_v20 = vpop.xlane.xlu1 %495  ;;  %v911_v42 = vmul.f32 %v3392_v14, %v815_v62  ;;  %v4342_v47 = vmul.f32 %v3388_v29, %v827_v60  ;;  %v922_v29 = vmul.f32 %v3390_v51, %v826_v19 }
 0x1cf   :  { %v493_v17 = vpop.xlane.xlu0 %492  ;;  %v3396_v34 = vpop.eup %3395  ;;  %v787_v50 = vmax.f32 %v755_v18, 0.0  ;;  %v4331_v12 = vmul.f32 0.015625, %v496_v20  ;;  %3409 = vpow2.f32 %v2781_v7  ;;  %v910_v30 = vmul.f32 %v3394_v16, %v814_v25 }
 0x1d0   :  { %v786_v63 = vmax.f32 %v754_v11, 0.0  ;;  %v3398_v28 = vpop.eup %3397  ;;  %v1200_v58 = vmul.f32 %v3396_v34, %v4218_v45  ;;  %v4335_v3 = vmul.f32 0.015625, %v493_v17  ;;  %3411 = vpow2.f32 %v2782_v26 }
 0x1d1   :  { %v851_v43 = vadd.f32 0.001, %v787_v50  ;;  %v733_v6 = vmul.f32 %v4331_v12, %v4331_v12  ;;  %v3400_v49 = vpop.eup %3399  ;;  %v1106_v35 = vadd.f32 1.0, %v3398_v28  ;;  %v947_v62 = vmul.f32 %v4115_v37, %v911_v42 }
 0x1d2   :  { %v850_v55 = vadd.f32 0.001, %v786_v63  ;;  %3177 = vmatprep.mubr.msk.f32.mxu1 %vm418_vm1, %v1200_v58  ;;  %v732_v45 = vmul.f32 %v4335_v3, %v4335_v3  ;;  %v657_v10 = vpop.xlane.xlu1 %656  ;;  %v1201_v14 = vmul.f32 %v3400_v49, %v4229_v4  ;;  %v3402_v13 = vpop.eup %3401  ;;  %v946_v60 = vmul.f32 %v4115_v37, %v910_v30 }
 0x1d3   :  { %v654_v52 = vpop.xlane.xlu0 %653  ;;  %3413 = vrsqrt.f32 %v851_v43  ;;  %v701_v18 = vmul.f32 0.015625, %v657_v10  ;;  %v1107_v17 = vadd.f32 1.0, %v3402_v13  ;;  %v816_v4 = vsub.f32 %v3937_v38, %v4271_v24 }
 0x1d4   :  { %v700_v11 = vmul.f32 0.015625, %v654_v52  ;;  %3415 = vrsqrt.f32 %v850_v55  ;;  %3178 = vmatmul.mubr.msk.f32.gmra.mrb[20].mxu1 %vm418_vm1, %v1201_v14  ;;  %v4356_v34 = vadd.f32 %v4124_v54, %v946_v60  ;;  %v4359_v32 = vadd.f32 %v4124_v54, %v947_v62 }
 0x1d5   :  { %v3404_v16 = vpop.eup %3403  ;;  %v765_v25 = vsub.f32 %v701_v18, %v733_v6  ;;  %3417 = vrcp.f32 %v1106_v35  ;;  %v958_v55 = vmul.f32 %v4115_v37, %v922_v29 }
 0x1d6   :  { %v764_v20 = vsub.f32 %v700_v11, %v732_v45  ;;  %v3406_v7 = vpop.eup %3405  ;;  %v502_v26 = vpop.xlane.xlu1 %501  ;;  %v913_v36 = vmul.f32 %v3404_v16, %v817_v8  ;;  %3419 = vrcp.f32 %v1107_v17  ;;  %v2783_v38 = vmul.f32 -1.442695, %v4356_v34 }
 0x1d7   :  { %v499_v42 = vpop.xlane.xlu0 %498  ;;  %v4361_v51 = vpop.eup %3407  ;;  %v797_v19 = vmax.f32 %v765_v25, 0.0  ;;  %v4363_v63 = vmul.f32 0.015625, %v502_v26  ;;  %v912_v24 = vmul.f32 %v3406_v7, %v816_v4  ;;  %3421 = vpow2.f32 %v2793_v22 }
 0x1d8   :  { %v796_v50 = vmax.f32 %v764_v20, 0.0  ;;  %v4365_v28 = vmul.f32 0.015625, %v499_v42  ;;  %v949_v58 = vmul.f32 %v4115_v37, %v913_v36  ;;  %3423 = vpow2.f32 %v2783_v38 }
 0x1d9   :  { %v735_v43 = vmul.f32 %v4363_v63, %v4363_v63  ;;  %v3410_v6 = vpop.eup %3409  ;;  %v2784_v52 = vmul.f32 -1.442695, %v4359_v32  ;;  %v948_v35 = vmul.f32 %v4115_v37, %v912_v24  ;;  %v861_v62 = vadd.f32 0.001, %v797_v19 }
 0x1da   :  { %v860_v30 = vadd.f32 0.001, %v796_v50  ;;  %v734_v49 = vmul.f32 %v4365_v28, %v4365_v28  ;;  %v663_v45 = vpop.xlane.xlu1 %662  ;;  %v1108_v11 = vadd.f32 1.0, %v3410_v6  ;;  %v3412_v13 = vpop.eup %3411  ;;  %v819_v22 = vsub.f32 %v3941_v40, %v4297_v46 }
 0x1db   :  { %v660_v10 = vpop.xlane.xlu0 %659  ;;  %v703_v14 = vmul.f32 0.015625, %v663_v45  ;;  %v4379_v8 = vadd.f32 %v4124_v54, %v948_v35  ;;  %v4382_v60 = vadd.f32 %v4124_v54, %v949_v58  ;;  %v1109_v20 = vadd.f32 1.0, %v3412_v13 }
 0x1dc   :  { %v702_v18 = vmul.f32 0.015625, %v660_v10  ;;  %3425 = vrsqrt.f32 %v860_v30  ;;  %v818_v7 = vsub.f32 %v3947_v44, %v4299_v2 }
 0x1dd   :  { %v3414_v29 = vpop.eup %3413  ;;  %v767_v16 = vsub.f32 %v703_v14, %v735_v43  ;;  %3427 = vrcp.f32 %v1108_v11  ;;  %v2785_v40 = vmul.f32 -1.442695, %v4379_v8  ;;  %v2786_v43 = vmul.f32 -1.442695, %v4382_v60 }
 0x1de   :  { %v766_v25 = vsub.f32 %v702_v18, %v734_v49  ;;  %v3416_v17 = vpop.eup %3415  ;;  %v508_v4 = vpop.xlane.xlu1 %507  ;;  %3429 = vpow2.f32 %v2784_v52  ;;  %v915_v46 = vmul.f32 %v3414_v29, %v819_v22  ;;  %v2794_v22 = vmul.f32 -1.442695, %v4325_v15 }
 0x1df   :  { %v505_v26 = vpop.xlane.xlu0 %504  ;;  %v3418_v42 = vpop.eup %3417  ;;  %3431 = vrsqrt.f32 %v861_v62  ;;  %v799_v36 = vmax.f32 %v767_v16, 0.0  ;;  %v4387_v50 = vmul.f32 0.015625, %v508_v4  ;;  %v914_v58 = vmul.f32 %v3416_v17, %v818_v7 }
 0x1e0   :  { %v798_v19 = vmax.f32 %v766_v25, 0.0  ;;  %v1202_v38 = vmul.f32 %v3418_v42, %v4275_v61  ;;  %v4390_v24 = vmul.f32 0.015625, %v505_v26  ;;  %3433 = vrcp.f32 %v1109_v20  ;;  %v3420_v6 = vpop.eup %3419 }
 0x1e1   :  { %v863_v30 = vadd.f32 0.001, %v799_v36  ;;  %v737_v2 = vmul.f32 %v4387_v50, %v4387_v50  ;;  %3435 = vpow2.f32 %v2785_v40  ;;  %v950_v61 = vmul.f32 %v4115_v37, %v914_v58  ;;  %v4400_v35 = vpop.eup %3421 }
 0x1e2   :  { %v862_v44 = vadd.f32 0.001, %v798_v19  ;;  %3180 = vmatprep.mubr.msk.f32.mxu1 %vm418_vm1, %v1202_v38  ;;  %v736_v49 = vmul.f32 %v4390_v24, %v4390_v24  ;;  %v669_v45 = vpop.xlane.xlu1 %668  ;;  %v951_v52 = vmul.f32 %v4115_v37, %v915_v46  ;;  %v1203_v62 = vmul.f32 %v3420_v6, %v4285_v56  ;;  %v3424_v11 = vpop.eup %3423 }
 0x1e3   :  { %v666_v10 = vpop.xlane.xlu0 %665  ;;  %3437 = vrsqrt.f32 %v863_v30  ;;  %v705_v14 = vmul.f32 0.015625, %v669_v45  ;;  %v4404_v13 = vadd.f32 %v4124_v54, %v950_v61  ;;  %v4408_v29 = vadd.f32 %v4124_v54, %v958_v55 }
 0x1e4   :  { %v704_v18 = vmul.f32 0.015625, %v666_v10  ;;  %3439 = vrsqrt.f32 %v862_v44  ;;  %3181 = vmatmul.mubr.msk.f32.gmra.mrb[22].mxu1 %vm418_vm1, %v1203_v62  ;;  %v1110_v20 = vadd.f32 1.0, %v3424_v11  ;;  %v828_v56 = vsub.f32 %v3909_v23, %v4335_v3 }
 0x1e5   :  { %v769_v16 = vsub.f32 %v705_v14, %v737_v2  ;;  %3441 = vpow2.f32 %v2786_v43  ;;  %v2787_v26 = vmul.f32 -1.442695, %v4404_v13  ;;  %v4415_v40 = vadd.f32 %v4124_v54, %v951_v52 }
 0x1e6   :  { %v768_v25 = vsub.f32 %v704_v18, %v736_v49  ;;  %v3426_v17 = vpop.eup %3425  ;;  %v514_v7 = vpop.xlane.xlu1 %513  ;;  %v959_v55 = vmul.f32 %v4115_v37, %v4342_v47  ;;  %v829_v42 = vsub.f32 %v3905_v21, %v4331_v12  ;;  %3443 = vrcp.f32 %v1110_v20 }
 0x1e7   :  { %v511_v4 = vpop.xlane.xlu0 %510  ;;  %v3428_v46 = vpop.eup %3427  ;;  %v801_v36 = vmax.f32 %v769_v16, 0.0  ;;  %v4421_v38 = vmul.f32 0.015625, %v514_v7  ;;  %v924_v30 = vmul.f32 %v3426_v17, %v828_v56  ;;  %v2795_v6 = vmul.f32 -1.442695, %v4408_v29 }
 0x1e8   :  { %v800_v19 = vmax.f32 %v768_v25, 0.0  ;;  %v3430_v58 = vpop.eup %3429  ;;  %v4423_v23 = vmul.f32 0.015625, %v511_v4  ;;  %v1204_v3 = vmul.f32 %v3428_v46, %v4322_v48  ;;  %3445 = vpow2.f32 %v2787_v26 }
 0x1e9   :  { %v3432_v44 = vpop.eup %3431  ;;  %v865_v2 = vadd.f32 0.001, %v801_v36  ;;  %v739_v47 = vmul.f32 %v4421_v38, %v4421_v38  ;;  %v1111_v10 = vadd.f32 1.0, %v3430_v58  ;;  %v2788_v48 = vmul.f32 -1.442695, %v4415_v40 }
 0x1ea   :  { %v864_v43 = vadd.f32 0.001, %v800_v19  ;;  %v3434_v21 = vpop.eup %3433  ;;  %v738_v12 = vmul.f32 %v4423_v23, %v4423_v23  ;;  %3183 = vmatprep.mubr.msk.f32.mxu1 %vm418_vm1, %v1204_v3  ;;  %v675_v49 = vpop.xlane.xlu1 %674  ;;  %v830_v18 = vsub.f32 %v3925_v31, %v4365_v28  ;;  %v960_v11 = vmul.f32 %v4115_v37, %v924_v30 }
 0x1eb   :  { %v672_v45 = vpop.xlane.xlu0 %671  ;;  %3447 = vrsqrt.f32 %v865_v2  ;;  %v1205_v61 = vmul.f32 %v3434_v21, %v4315_v9  ;;  %v707_v52 = vmul.f32 0.015625, %v675_v49  ;;  %v3436_v14 = vpop.eup %3435  ;;  %v925_v16 = vmul.f32 %v3432_v44, %v829_v42 }
 0x1ec   :  { %v706_v62 = vmul.f32 0.015625, %v672_v45  ;;  %3449 = vrsqrt.f32 %v864_v43  ;;  %v1112_v56 = vadd.f32 1.0, %v3436_v14  ;;  %v831_v9 = vsub.f32 %v3917_v27, %v4363_v63 }
 0x1ed   :  { %v3438_v25 = vpop.eup %3437  ;;  %3184 = vmatmul.mubr.msk.f32.gmra.mrb[24].mxu1 %vm418_vm1, %v1205_v61  ;;  %v771_v20 = vsub.f32 %v707_v52, %v739_v47  ;;  %3451 = vrcp.f32 %v1111_v10  ;;  %v4441_v4 = vadd.f32 %v4124_v54, %v959_v55  ;;  %v961_v36 = vmul.f32 %v4115_v37, %v925_v16  ;;  %v3711_v47 = vld [vmem:[%s5354_s2] ss:$0 sm:$0xff] }
 0x1ee   :  { %v770_v17 = vsub.f32 %v706_v62, %v738_v12  ;;  %v3440_v7 = vpop.eup %3439  ;;  %3453 = vpow2.f32 %v2788_v48  ;;  %v927_v19 = vmul.f32 %v3438_v25, %v831_v9  ;;  %v4445_v30 = vadd.f32 %v4124_v54, %v960_v11 }
 0x1ef   :  { %v3442_v31 = vpop.eup %3441  ;;  %v803_v28 = vmax.f32 %v771_v20, 0.0  ;;  %3455 = vrcp.f32 %v1112_v56  ;;  %v926_v46 = vmul.f32 %v3440_v7, %v830_v18  ;;  %v2796_v63 = vmul.f32 -1.442695, %v4441_v4 }
 0x1f0   :  { %v802_v26 = vmax.f32 %v770_v17, 0.0  ;;  %v1113_v42 = vadd.f32 1.0, %v3442_v31  ;;  %3457 = vpow2.f32 %v2794_v22  ;;  %v3444_v27 = vpop.eup %3443  ;;  %v833_v22 = vsub.f32 %v3929_v33, %v4387_v50  ;;  %v3712_v33 = vld [vmem:[%s5354_s2 + $0x1] ss:$0 sm:$0xff] }
 0x1f1   :  { %v867_v58 = vadd.f32 0.001, %v803_v28  ;;  %3459 = vpow2.f32 %v2795_v6  ;;  %v962_v55 = vmul.f32 %v4115_v37, %v926_v46  ;;  %v1206_v44 = vmul.f32 %v3444_v27, %v4356_v34 }
 0x1f2   :  { %v866_v3 = vadd.f32 0.001, %v802_v26  ;;  %3461 = vrcp.f32 %v1113_v42  ;;  %v3446_v2 = vpop.eup %3445  ;;  %v4453_v43 = vadd.f32 %v4124_v54, %v961_v36  ;;  %v963_v6 = vmul.f32 %v3711_v47, %v927_v19 }
 0x1f3   :  { %3463 = vrsqrt.f32 %v867_v58  ;;  %v832_v37 = vsub.f32 %v3939_v39, %v4390_v24  ;;  %3186 = vmatprep.mubr.msk.f32.mxu1 %vm418_vm1, %v1206_v44  ;;  %v1114_v34 = vadd.f32 1.0, %v3446_v2  ;;  %v2797_v12 = vmul.f32 -1.442695, %v4445_v30 }
 0x1f4   :  { %3465 = vrsqrt.f32 %v866_v3  ;;  %v4465_v54 = vadd.f32 %v3712_v33, %v962_v55  ;;  %v1117_v49 = vadd.f32 1.0, %v4238_v59  ;;  %v2798_v61 = vmul.f32 -1.442695, %v4453_v43 }
 0x1f5   :  { %v3448_v21 = vpop.eup %3447  ;;  %3467 = vpow2.f32 %v2796_v63  ;;  %v4470_v52 = vadd.f32 %v3712_v33, %v963_v6  ;;  %v1118_v20 = vadd.f32 1.0, %v4301_v57  ;;  %v1119_v17 = vadd.f32 1.0, %v4361_v51  ;;  %v5365_v57 = vld [vmem:[#allocation2_spill] sm:$0xff] }
 0x1f6   :  { %v3450_v50 = vpop.eup %3449  ;;  %v929_v45 = vmul.f32 %v3448_v21, %v833_v22  ;;  %3469 = vrcp.f32 %v1114_v34  ;;  %v2799_v11 = vmul.f32 -1.442695, %v4465_v54  ;;  %v835_v9 = vsub.f32 %v3943_v41, %v4421_v38 }
 0x1f7   :  { %v3452_v10 = vpop.eup %3451  ;;  %v928_v48 = vmul.f32 %v3450_v50, %v832_v37  ;;  %3471 = vpow2.f32 %v2797_v12  ;;  %v2800_v31 = vmul.f32 -1.442695, %v4470_v52  ;;  %v834_v26 = vsub.f32 %v5365_v57, %v4423_v23 }
 0x1f8   :  { %v3454_v39 = vpop.eup %3453  ;;  %v1207_v24 = vmul.f32 %v3452_v10, %v4359_v32  ;;  %v965_v62 = vmul.f32 %v3711_v47, %v929_v45  ;;  %3473 = vrcp.f32 %v1117_v49  ;;  %v1120_v41 = vadd.f32 1.0, %v4400_v35  ;;  %v5366_v49 = vld [vmem:[#allocation3_spill] sm:$0xff] }
 0x1f9   :  { %v3456_v14 = vpop.eup %3455  ;;  %v1115_v18 = vadd.f32 1.0, %v3454_v39  ;;  %v964_v16 = vmul.f32 %v3711_v47, %v928_v48 }
 0x1fa   :  { %v3458_v59 = vpop.eup %3457  ;;  %3187 = vmatmul.mubr.msk.f32.gmra.mrb[26].mxu1 %vm418_vm1, %v1207_v24  ;;  %v1208_v25 = vmul.f32 %v3456_v14, %v4379_v8  ;;  %v4483_v28 = vadd.f32 %v3712_v33, %v965_v62  ;;  %v5367_v24 = vld [vmem:[#allocation4_spill] sm:$0xff] }
 0x1fb   :  { %v3460_v32 = vpop.eup %3459  ;;  %3475 = vrcp.f32 %v1115_v18  ;;  %v4477_v56 = vadd.f32 %v3712_v33, %v964_v16  ;;  %v1121_v27 = vadd.f32 1.0, %v3458_v59 }
 0x1fc   :  { %v3462_v7 = vpop.eup %3461  ;;  %3189 = vmatprep.mubr.msk.f32.mxu1 %vm418_vm1, %v1208_v25  ;;  %3477 = vpow2.f32 %v2798_v61  ;;  %v2802_v58 = vmul.f32 -1.442695, %v4483_v28  ;;  %v1122_v55 = vadd.f32 1.0, %v3460_v32 }
 0x1fd   :  { %v3464_v8 = vpop.eup %3463  ;;  %v1209_v46 = vmul.f32 %v3462_v7, %v4382_v60  ;;  %3479 = vpow2.f32 %v2799_v11  ;;  %v2801_v51 = vmul.f32 -1.442695, %v4477_v56 }
 0x1fe   :  { %v3466_v42 = vpop.eup %3465  ;;  %3481 = vrcp.f32 %v1118_v20  ;;  %v931_v38 = vmul.f32 %v3464_v8, %v835_v9 }
 0x1ff   :  { %3190 = vmatmul.mubr.msk.f32.gmra.mrb[28].mxu1 %vm418_vm1, %v1209_v46  ;;  %3483 = vrcp.f32 %v1119_v17  ;;  %v930_v36 = vmul.f32 %v3466_v42, %v834_v26  ;;  %v3468_v19 = vpop.eup %3467 }
 0x200   :  { %3485 = vpow2.f32 %v2800_v31  ;;  %v967_v3 = vmul.f32 %v3711_v47, %v931_v38  ;;  %v3470_v23 = vpop.eup %3469  ;;  %v1123_v37 = vadd.f32 1.0, %v3468_v19 }
 0x201   :  { %3487 = vpow2.f32 %v2801_v51  ;;  %v966_v60 = vmul.f32 %v3711_v47, %v930_v36  ;;  %v1210_v63 = vmul.f32 %v3470_v23, %v4404_v13  ;;  %v3472_v35 = vpop.eup %3471 }
 0x202   :  { %3489 = vrcp.f32 %v1120_v41  ;;  %v4493_v44 = vadd.f32 %v3712_v33, %v967_v3  ;;  %v3474_v22 = vpop.eup %3473  ;;  %v1124_v12 = vadd.f32 1.0, %v3472_v35 }
 0x203   :  { %v4495_v2 = vadd.f32 %v3712_v33, %v966_v60  ;;  %3192 = vmatprep.mubr.msk.f32.mxu1 %vm418_vm1, %v1210_v63  ;;  %3491 = vpow2.f32 %v2802_v58  ;;  %v1212_v33 = vmul.f32 %v4287_v0, %v5366_v49  ;;  %v1213_v61 = vmul.f32 %v3474_v22, %v5367_v24 }
 0x204   :  { %v2804_v6 = vmul.f32 -1.442695, %v4493_v44  ;;  %3493 = vrcp.f32 %v1121_v27 }
 0x205   :  { %v3476_v21 = vpop.eup %3475  ;;  %v2803_v47 = vmul.f32 -1.442695, %v4495_v2  ;;  %3495 = vrcp.f32 %v1122_v55 }
 0x206   :  { %v3478_v34 = vpop.eup %3477  ;;  %v1211_v13 = vmul.f32 %v3476_v21, %v4415_v40 }
 0x207   :  { %v3480_v50 = vpop.eup %3479  ;;  %3497 = vpow2.f32 %v2803_v47  ;;  %v1125_v48 = vadd.f32 1.0, %v3478_v34 }
 0x208   :  { %v3482_v45 = vpop.eup %3481  ;;  %3193 = vmatmul.mubr.msk.f32.gmra.mrb[30].mxu1 %vm418_vm1, %v1211_v13  ;;  %3499 = vpow2.f32 %v2804_v6  ;;  %v1126_v40 = vadd.f32 1.0, %v3480_v50 }
 0x209   :  { %v3484_v10 = vpop.eup %3483  ;;  %3195 = vmatprep.mubr.msk.f32.mxu1 %vm418_vm1, %v1212_v33  ;;  %3501 = vrcp.f32 %v1123_v37  ;;  %v1214_v14 = vmul.f32 %v3482_v45, %v4236_v53 }
 0x20a   :  { %v3486_v39 = vpop.eup %3485  ;;  %3503 = vrcp.f32 %v1124_v12  ;;  %v1215_v16 = vmul.f32 %v3484_v10, %v4267_v5 }
 0x20b   :  { %v3488_v62 = vpop.eup %3487  ;;  %3505 = vrcp.f32 %v1125_v48  ;;  %v1127_v0 = vadd.f32 1.0, %v3486_v39 }
 0x20c   :  { %v3490_v18 = vpop.eup %3489  ;;  %3196 = vmatmul.mubr.msk.f32.gmra.mrb[32].mxu1 %vm418_vm1, %v1213_v61  ;;  %3507 = vrcp.f32 %v1126_v40  ;;  %v1128_v59 = vadd.f32 1.0, %v3488_v62 }
 0x20d   :  { %3198 = vmatprep.mubr.msk.f32.mxu1 %vm418_vm1, %v1214_v14  ;;  %v3492_v11 = vpop.eup %3491  ;;  %v1216_v20 = vmul.f32 %v3490_v18, %v4306_v1  ;;  %3509 = vrcp.f32 %v1127_v0 }
 0x20e   :  { %v3494_v25 = vpop.eup %3493  ;;  %v1129_v53 = vadd.f32 1.0, %v3492_v11  ;;  %3511 = vrcp.f32 %v1128_v59 }
 0x20f   :  { %v3496_v32 = vpop.eup %3495  ;;  %v1217_v9 = vmul.f32 %v3494_v25, %v4325_v15 }
 0x210   :  { %3199 = vmatmul.mubr.msk.f32.gmra.mrb[34].mxu1 %vm418_vm1, %v1215_v16  ;;  %v1218_v5 = vmul.f32 %v3496_v32, %v4408_v29 }
 0x211   :  { %v3498_v17 = vpop.eup %3497  ;;  %3201 = vmatprep.mubr.msk.f32.mxu1 %vm418_vm1, %v1216_v20 }
 0x212   :  { %v3500_v7 = vpop.eup %3499  ;;  %v1130_v31 = vadd.f32 1.0, %v3498_v17 }
 0x213   :  { %v3502_v8 = vpop.eup %3501  ;;  %v1131_v57 = vadd.f32 1.0, %v3500_v7  ;;  %v2368_v7 = vld [vmem:[%s5355_s5 + $0x8] sm:$0xff] }
 0x214   :  { %v3504_v26 = vpop.eup %3503  ;;  %3202 = vmatmul.mubr.msk.f32.gmra.mrb[36].mxu1 %vm418_vm1, %v1217_v9  ;;  %3513 = vrcp.f32 %v1130_v31  ;;  %v1219_v1 = vmul.f32 %v3502_v8, %v4441_v4  ;;  %v2369_v31 = vld [vmem:[%s5355_s5 + $0x10] sm:$0xff]  ;;  %v2370_v8 = vld [vmem:[%s5355_s5 + $0x18] sm:$0xff] }
 0x215   :  { %3204 = vmatprep.mubr.msk.f32.mxu1 %vm418_vm1, %v1218_v5  ;;  %3515 = vrcp.f32 %v1129_v53  ;;  %v3506_v46 = vpop.eup %3505  ;;  %v1220_v51 = vmul.f32 %v3504_v26, %v4445_v30  ;;  %v2367_v53 = vld [vmem:[%s5355_s5] sm:$0xff]  ;;  %v3311_v5 = vpack.c.bf16 %v2370_v8, %v2369_v31 }
 0x216   :  { %3517 = vrcp.f32 %v1131_v57  ;;  %v3508_v15 = vpop.eup %3507  ;;  %v1221_v29 = vmul.f32 %v3506_v46, %v4453_v43  ;;  %v3307_v9 = vpack.c.bf16 %v2368_v7, %v2367_v53 }
 0x217   :  { %v3510_v42 = vpop.eup %3509  ;;  %v1222_v41 = vmul.f32 %v3508_v15, %v4465_v54 }
 0x218   :  { %3205 = vmatmul.mubr.msk.f32.gmra.mrb[38].mxu1 %vm418_vm1, %v1219_v1  ;;  %v3512_v38 = vpop.eup %3511  ;;  %v1223_v36 = vmul.f32 %v3510_v42, %v4470_v52  ;;  %3308 = vmatprep.subr.bf16.mxu0 %v3307_v9 }
 0x219   :  { %3207 = vmatprep.mubr.msk.f32.mxu1 %vm418_vm1, %v1220_v51  ;;  %v1224_v19 = vmul.f32 %v3512_v38, %v4477_v56  ;;  %3310 = vmatpush3.bf16.msra.mxu0 %v3307_v9 }
 0x21a   :  { %3312 = vmatprep.subr.bf16.mxu0 %v3311_v5 }
 0x21c   :  { %3208 = vmatmul.mubr.msk.f32.gmra.mrb[40].mxu1 %vm418_vm1, %v1221_v29 }
 0x21d   :  { %3210 = vmatprep.mubr.msk.f32.mxu1 %vm418_vm1, %v1222_v41  ;;  %3314 = vmatpush3.bf16.msra.mxu0 %v3311_v5 }
 0x21e   :  { %v3514_v4 = vpop.eup %3513 }
 0x21f   :  { %v3516_v30 = vpop.eup %3515  ;;  %v1226_v43 = vmul.f32 %v3514_v4, %v4495_v2 }
 0x220   :  { %3211 = vmatmul.mubr.msk.f32.gmra.mrb[42].mxu1 %vm418_vm1, %v1223_v36  ;;  %v3518_v58 = vpop.eup %3517  ;;  %v1225_v54 = vmul.f32 %v3516_v30, %v4483_v28  ;;  %v2371_v30 = vld [vmem:[%s5355_s5 + $0x20] sm:$0xff] }
 0x221   :  { %3213 = vmatprep.mubr.msk.f32.mxu1 %vm418_vm1, %v1224_v19  ;;  %v1227_v3 = vmul.f32 %v3518_v58, %v4493_v44  ;;  %v2372_v19 = vld [vmem:[%s5355_s5 + $0x28] sm:$0xff]  ;;  %v2373_v58 = vld [vmem:[%s5355_s5 + $0x30] sm:$0xff] }
 0x224   :  { %3214 = vmatmul.mubr.msk.f32.gmra.mrb[44].mxu1 %vm418_vm1, %v1225_v54  ;;  %v3315_v54 = vpack.c.bf16 %v2372_v19, %v2371_v30 }
 0x225   :  { %3216 = vmatprep.mubr.msk.f32.mxu1 %vm418_vm1, %v1226_v43 }
 0x226   :  { %3316 = vmatprep.subr.bf16.mxu0 %v3315_v54 }
 0x227   :  { %3318 = vmatpush3.bf16.msra.mxu0 %v3315_v54 }
 0x228   :  { %3217 = vmatmul.mubr.msk.f32.gmra.mrb[46].mxu1 %vm418_vm1, %v1227_v3  ;;  %v2374_v3 = vld [vmem:[%s5355_s5 + $0x38] sm:$0xff] }
 0x285   :  { %v4535_v52 = vpop.f32.mrb[16].mxu1 }
 0x286   :  { %v4537_v56 = vpop.f32.mrb[17].mxu1  ;;  %v1562_v23 = vsel %vm418_vm1, %v4535_v52, 0.0  ;;  %v1688_v27 = vmul.f32 %v4535_v52, %v4535_v52 }
 0x287   :  { %1563 = vadd.xlane.f32.xlu1 %v1562_v23  ;;  %v1559_v28 = vsel %vm418_vm1, %v4537_v56, 0.0  ;;  %v1687_v60 = vmul.f32 %v4537_v56, %v4537_v56 }
 0x288   :  { %1560 = vadd.xlane.f32.xlu0 %v1559_v28  ;;  %v1722_v63 = vsel %vm418_vm1, %v1688_v27, 0.0  ;;  %v3319_v27 = vpack.c.bf16 %v2374_v3, %v2373_v58 }
 0x289   :  { %v1719_v55 = vsel %vm418_vm1, %v1687_v60, 0.0 }
 0x28a   :  { %3320 = vmatprep.subr.bf16.mxu0 %v3319_v27 }
 0x28b   :  { %1723 = vadd.xlane.f32.xlu1 %v1722_v63  ;;  %3322 = vmatpush3.bf16.msra.mxu0 %v3319_v27 }
 0x28c   :  { %1720 = vadd.xlane.f32.xlu0 %v1719_v55 }
 0x293   :  { %v4549_v44 = vpop.f32.mrb[18].mxu1 }
 0x294   :  { %v4551_v35 = vpop.f32.mrb[19].mxu1  ;;  %v1568_v2 = vsel %vm418_vm1, %v4549_v44, 0.0  ;;  %v1690_v22 = vmul.f32 %v4549_v44, %v4549_v44 }
 0x295   :  { %1569 = vadd.xlane.f32.xlu1 %v1568_v2  ;;  %v1565_v6 = vsel %vm418_vm1, %v4551_v35, 0.0  ;;  %v1689_v21 = vmul.f32 %v4551_v35, %v4551_v35 }
 0x296   :  { %1566 = vadd.xlane.f32.xlu0 %v1565_v6  ;;  %v1728_v37 = vsel %vm418_vm1, %v1690_v22, 0.0 }
 0x297   :  { %v1725_v47 = vsel %vm418_vm1, %v1689_v21, 0.0 }
 0x299   :  { %1729 = vadd.xlane.f32.xlu1 %v1728_v37 }
 0x29a   :  { %1726 = vadd.xlane.f32.xlu0 %v1725_v47 }
 0x2a7   :  { %v4563_v34 = vpop.f32.mrb[20].mxu1 }
 0x2a8   :  { %v4565_v13 = vpop.f32.mrb[21].mxu1  ;;  %v1574_v12 = vsel %vm418_vm1, %v4563_v34, 0.0  ;;  %v1692_v50 = vmul.f32 %v4563_v34, %v4563_v34 }
 0x2a9   :  { %1575 = vadd.xlane.f32.xlu1 %v1574_v12  ;;  %v1571_v49 = vsel %vm418_vm1, %v4565_v13, 0.0  ;;  %v1691_v33 = vmul.f32 %v4565_v13, %v4565_v13 }
 0x2aa   :  { %1572 = vadd.xlane.f32.xlu0 %v1571_v49  ;;  %v1734_v45 = vsel %vm418_vm1, %v1692_v50, 0.0 }
 0x2ab   :  { %v1731_v10 = vsel %vm418_vm1, %v1691_v33, 0.0 }
 0x2ad   :  { %1735 = vadd.xlane.f32.xlu1 %v1734_v45 }
 0x2ae   :  { %1732 = vadd.xlane.f32.xlu0 %v1731_v10 }
 0x2b7   :  { %v4577_v48 = vpop.f32.mrb[22].mxu1 }
 0x2b8   :  { %v4579_v39 = vpop.f32.mrb[23].mxu1  ;;  %v1580_v24 = vsel %vm418_vm1, %v4577_v48, 0.0  ;;  %v1694_v61 = vmul.f32 %v4577_v48, %v4577_v48 }
 0x2b9   :  { %1581 = vadd.xlane.f32.xlu1 %v1580_v24  ;;  %v1577_v40 = vsel %vm418_vm1, %v4579_v39, 0.0  ;;  %v1693_v62 = vmul.f32 %v4579_v39, %v4579_v39 }
 0x2ba   :  { %1578 = vadd.xlane.f32.xlu0 %v1577_v40  ;;  %v1740_v14 = vsel %vm418_vm1, %v1694_v61, 0.0 }
 0x2bb   :  { %v1737_v18 = vsel %vm418_vm1, %v1693_v62, 0.0 }
 0x2bd   :  { %1741 = vadd.xlane.f32.xlu1 %v1740_v14 }
 0x2be   :  { %1738 = vadd.xlane.f32.xlu0 %v1737_v18 }
 0x2c0   :  { %v4591_v0 = vpop.f32.mrb[24].mxu1 }
 0x2c1   :  { %v4593_v11 = vpop.f32.mrb[25].mxu1  ;;  %v1586_v16 = vsel %vm418_vm1, %v4591_v0, 0.0  ;;  %v1696_v59 = vmul.f32 %v4591_v0, %v4591_v0 }
 0x2c2   :  { %1587 = vadd.xlane.f32.xlu1 %v1586_v16  ;;  %v1583_v25 = vsel %vm418_vm1, %v4593_v11, 0.0  ;;  %v1695_v20 = vmul.f32 %v4593_v11, %v4593_v11 }
 0x2c3   :  { %1584 = vadd.xlane.f32.xlu0 %v1583_v25  ;;  %v1746_v32 = vsel %vm418_vm1, %v1696_v59, 0.0 }
 0x2c4   :  { %v1743_v17 = vsel %vm418_vm1, %v1695_v20, 0.0 }
 0x2c6   :  { %1747 = vadd.xlane.f32.xlu1 %v1746_v32 }
 0x2c7   :  { %1744 = vadd.xlane.f32.xlu0 %v1743_v17 }
 0x2cd   :  { %v4617_v57 = vpop.f32.mrb[26].mxu1 }
 0x2ce   :  { %v4619_v26 = vpop.f32.mrb[27].mxu1  ;;  %v1592_v1 = vsel %vm418_vm1, %v4617_v57, 0.0  ;;  %v1698_v46 = vmul.f32 %v4617_v57, %v4617_v57 }
 0x2cf   :  { %1593 = vadd.xlane.f32.xlu1 %v1592_v1  ;;  %v1589_v51 = vsel %vm418_vm1, %v4619_v26, 0.0  ;;  %v1697_v15 = vmul.f32 %v4619_v26, %v4619_v26 }
 0x2d0   :  { %1590 = vadd.xlane.f32.xlu0 %v1589_v51  ;;  %v1752_v29 = vsel %vm418_vm1, %v1698_v46, 0.0 }
 0x2d1   :  { %v1749_v41 = vsel %vm418_vm1, %v1697_v15, 0.0 }
 0x2d2   :  { %v4630_v42 = vpop.f32.mrb[28].mxu1 }
 0x2d3   :  { %1753 = vadd.xlane.f32.xlu1 %v1752_v29  ;;  %v4633_v38 = vpop.f32.mrb[29].mxu1  ;;  %v1598_v4 = vsel %vm418_vm1, %v4630_v42, 0.0  ;;  %v1700_v43 = vmul.f32 %v4630_v42, %v4630_v42 }
 0x2d4   :  { %1750 = vadd.xlane.f32.xlu0 %v1749_v41  ;;  %v1595_v36 = vsel %vm418_vm1, %v4633_v38, 0.0  ;;  %v1699_v23 = vmul.f32 %v4633_v38, %v4633_v38 }
 0x2d5   :  { %v1758_v28 = vsel %vm418_vm1, %v1700_v43, 0.0 }
 0x2d6   :  { %v1755_v60 = vsel %vm418_vm1, %v1699_v23, 0.0 }
 0x2d7   :  { %1599 = vadd.xlane.f32.xlu1 %v1598_v4 }
 0x2d8   :  { %1596 = vadd.xlane.f32.xlu0 %v1595_v36 }
 0x2db   :  { %1759 = vadd.xlane.f32.xlu1 %v1758_v28  ;;  %v4657_v63 = vpop.f32.mrb[30].mxu1 }
 0x2dc   :  { %1756 = vadd.xlane.f32.xlu0 %v1755_v60  ;;  %v4659_v55 = vpop.f32.mrb[31].mxu1  ;;  %v1604_v2 = vsel %vm418_vm1, %v4657_v63, 0.0  ;;  %v1702_v6 = vmul.f32 %v4657_v63, %v4657_v63 }
 0x2dd   :  { %v1601_v22 = vsel %vm418_vm1, %v4659_v55, 0.0  ;;  %v1701_v37 = vmul.f32 %v4659_v55, %v4659_v55 }
 0x2de   :  { %v1764_v12 = vsel %vm418_vm1, %v1702_v6, 0.0 }
 0x2df   :  { %1605 = vadd.xlane.f32.xlu1 %v1604_v2  ;;  %v4667_v21 = vpop.f32.mrb[32].mxu1  ;;  %v1761_v50 = vsel %vm418_vm1, %v1701_v37, 0.0 }
 0x2e0   :  { %1602 = vadd.xlane.f32.xlu0 %v1601_v22  ;;  %v4671_v47 = vpop.f32.mrb[33].mxu1  ;;  %v1704_v45 = vmul.f32 %v4667_v21, %v4667_v21  ;;  %v1610_v10 = vsel %vm418_vm1, %v4667_v21, 0.0 }
 0x2e1   :  { %v1703_v24 = vmul.f32 %v4671_v47, %v4671_v47  ;;  %v1607_v61 = vsel %vm418_vm1, %v4671_v47, 0.0 }
 0x2e2   :  { %v1770_v14 = vsel %vm418_vm1, %v1704_v45, 0.0 }
 0x2e3   :  { %1765 = vadd.xlane.f32.xlu1 %v1764_v12  ;;  %v4675_v49 = vpop.f32.mrb[34].mxu1  ;;  %v1767_v18 = vsel %vm418_vm1, %v1703_v24, 0.0 }
 0x2e4   :  { %1762 = vadd.xlane.f32.xlu0 %v1761_v50  ;;  %v4677_v33 = vpop.f32.mrb[35].mxu1  ;;  %v1706_v25 = vmul.f32 %v4675_v49, %v4675_v49  ;;  %v1616_v20 = vsel %vm418_vm1, %v4675_v49, 0.0 }
 0x2e5   :  { %v1705_v32 = vmul.f32 %v4677_v33, %v4677_v33  ;;  %v1613_v17 = vsel %vm418_vm1, %v4677_v33, 0.0 }
 0x2e6   :  { %v1776_v9 = vsel %vm418_vm1, %v1706_v25, 0.0 }
 0x2e7   :  { %1611 = vadd.xlane.f32.xlu1 %v1610_v10  ;;  %v4687_v40 = vpop.f32.mrb[36].mxu1  ;;  %v1773_v31 = vsel %vm418_vm1, %v1705_v32, 0.0 }
 0x2e8   :  { %1608 = vadd.xlane.f32.xlu0 %v1607_v61  ;;  %v4689_v62 = vpop.f32.mrb[37].mxu1  ;;  %v1708_v1 = vmul.f32 %v4687_v40, %v4687_v40  ;;  %v1622_v46 = vsel %vm418_vm1, %v4687_v40, 0.0 }
 0x2e9   :  { %v1707_v51 = vmul.f32 %v4689_v62, %v4689_v62  ;;  %v1619_v15 = vsel %vm418_vm1, %v4689_v62, 0.0 }
 0x2ea   :  { %v1782_v4 = vsel %vm418_vm1, %v1708_v1, 0.0 }
 0x2eb   :  { %1771 = vadd.xlane.f32.xlu1 %v1770_v14  ;;  %v4693_v16 = vpop.f32.mrb[38].mxu1  ;;  %v1779_v36 = vsel %vm418_vm1, %v1707_v51, 0.0 }
 0x2ec   :  { %1768 = vadd.xlane.f32.xlu0 %v1767_v18  ;;  %v4695_v59 = vpop.f32.mrb[39].mxu1  ;;  %v1710_v58 = vmul.f32 %v4693_v16, %v4693_v16  ;;  %v1628_v43 = vsel %vm418_vm1, %v4693_v16, 0.0 }
 0x2ed   :  { %v1709_v54 = vmul.f32 %v4695_v59, %v4695_v59  ;;  %v1625_v3 = vsel %vm418_vm1, %v4695_v59, 0.0 }
 0x2ee   :  { %v1788_v23 = vsel %vm418_vm1, %v1710_v58, 0.0 }
 0x2ef   :  { %1617 = vadd.xlane.f32.xlu1 %v1616_v20  ;;  %v4705_v53 = vpop.f32.mrb[40].mxu1  ;;  %v1785_v27 = vsel %vm418_vm1, %v1709_v54, 0.0 }
 0x2f0   :  { %1614 = vadd.xlane.f32.xlu0 %v1613_v17  ;;  %v4707_v7 = vpop.f32.mrb[41].mxu1  ;;  %v1712_v28 = vmul.f32 %v4705_v53, %v4705_v53  ;;  %v1634_v60 = vsel %vm418_vm1, %v4705_v53, 0.0 }
 0x2f1   :  { %v1711_v2 = vmul.f32 %v4707_v7, %v4707_v7  ;;  %v1631_v22 = vsel %vm418_vm1, %v4707_v7, 0.0 }
 0x2f2   :  { %v1794_v6 = vsel %vm418_vm1, %v1712_v28, 0.0 }
 0x2f3   :  { %1777 = vadd.xlane.f32.xlu1 %v1776_v9  ;;  %v4711_v8 = vpop.f32.mrb[42].mxu1  ;;  %v1791_v37 = vsel %vm418_vm1, %v1711_v2, 0.0 }
 0x2f4   :  { %1774 = vadd.xlane.f32.xlu0 %v1773_v31  ;;  %v4713_v5 = vpop.f32.mrb[43].mxu1  ;;  %v1714_v12 = vmul.f32 %v4711_v8, %v4711_v8  ;;  %v1640_v50 = vsel %vm418_vm1, %v4711_v8, 0.0 }
 0x2f5   :  { %v1713_v45 = vmul.f32 %v4713_v5, %v4713_v5  ;;  %v1637_v10 = vsel %vm418_vm1, %v4713_v5, 0.0 }
 0x2f6   :  { %v1800_v24 = vsel %vm418_vm1, %v1714_v12, 0.0 }
 0x2f7   :  { %1623 = vadd.xlane.f32.xlu1 %v1622_v46  ;;  %v4723_v29 = vpop.f32.mrb[44].mxu1  ;;  %v1797_v61 = vsel %vm418_vm1, %v1713_v45, 0.0 }
 0x2f8   :  { %1620 = vadd.xlane.f32.xlu0 %v1619_v15  ;;  %v4725_v41 = vpop.f32.mrb[45].mxu1  ;;  %v1716_v14 = vmul.f32 %v4723_v29, %v4723_v29  ;;  %v1646_v18 = vsel %vm418_vm1, %v4723_v29, 0.0 }
 0x2f9   :  { %v1715_v25 = vmul.f32 %v4725_v41, %v4725_v41  ;;  %v1643_v20 = vsel %vm418_vm1, %v4725_v41, 0.0 }
 0x2fa   :  { %v1806_v1 = vsel %vm418_vm1, %v1716_v14, 0.0 }
 0x2fb   :  { %1783 = vadd.xlane.f32.xlu1 %v1782_v4  ;;  %v4729_v30 = vpop.f32.mrb[46].mxu1  ;;  %v1803_v46 = vsel %vm418_vm1, %v1715_v25, 0.0 }
 0x2fc   :  { %1780 = vadd.xlane.f32.xlu0 %v1779_v36  ;;  %v4731_v19 = vpop.f32.mrb[47].mxu1  ;;  %v1718_v54 = vmul.f32 %v4729_v30, %v4729_v30 }
 0x2fd   :  { %v1649_v28 = vsel %vm418_vm1, %v4731_v19, 0.0 }
 0x2ff   :  { %1629 = vadd.xlane.f32.xlu1 %v1628_v43 }
 0x300   :  { %1626 = vadd.xlane.f32.xlu0 %v1625_v3  ;;  %v1652_v3 = vsel %vm418_vm1, %v4729_v30, 0.0 }
 0x303   :  { %1789 = vadd.xlane.f32.xlu1 %v1788_v23 }
 0x304   :  { %1786 = vadd.xlane.f32.xlu0 %v1785_v27  ;;  %v1717_v27 = vmul.f32 %v4731_v19, %v4731_v19 }
 0x307   :  { %1635 = vadd.xlane.f32.xlu1 %v1634_v60 }
 0x308   :  { %1632 = vadd.xlane.f32.xlu0 %v1631_v22 }
 0x30b   :  { %1795 = vadd.xlane.f32.xlu1 %v1794_v6 }
 0x30c   :  { %1792 = vadd.xlane.f32.xlu0 %v1791_v37  ;;  %v1812_v37 = vsel %vm418_vm1, %v1718_v54, 0.0 }
 0x30f   :  { %1641 = vadd.xlane.f32.xlu1 %v1640_v50  ;;  %v1809_v50 = vsel %vm418_vm1, %v1717_v27, 0.0 }
 0x310   :  { %1638 = vadd.xlane.f32.xlu0 %v1637_v10 }
 0x313   :  { %1801 = vadd.xlane.f32.xlu1 %v1800_v24 }
 0x314   :  { %1798 = vadd.xlane.f32.xlu0 %v1797_v61  ;;  %v1564_v32 = vpop.xlane.xlu1 %1563 }
 0x315   :  { %v1656_v17 = vmul.f32 0.015625, %v1564_v32  ;;  %v1561_v9 = vpop.xlane.xlu0 %1560 }
 0x316   :  { %v1655_v31 = vmul.f32 0.015625, %v1561_v9 }
 0x317   :  { %1647 = vadd.xlane.f32.xlu1 %v1646_v18  ;;  %v1848_v15 = vmul.f32 %v1656_v17, %v1656_v17 }
 0x318   :  { %1644 = vadd.xlane.f32.xlu0 %v1643_v20  ;;  %v1724_v51 = vpop.xlane.xlu1 %1723  ;;  %v1847_v58 = vmul.f32 %v1655_v31, %v1655_v31 }
 0x319   :  { %v1816_v4 = vmul.f32 0.015625, %v1724_v51  ;;  %v1721_v36 = vpop.xlane.xlu0 %1720 }
 0x31a   :  { %v1815_v43 = vmul.f32 0.015625, %v1721_v36  ;;  %v4788_v36 = vld [vmem:[%s5356_s4] ss:$0 sm:$0xff] }
 0x31b   :  { %1807 = vadd.xlane.f32.xlu1 %v1806_v1  ;;  %v1880_v23 = vsub.f32 %v1816_v4, %v1848_v15  ;;  %v1943_v4 = vsub.f32 %v4537_v56, %v1655_v31 }
 0x31c   :  { %1804 = vadd.xlane.f32.xlu0 %v1803_v46  ;;  %v1879_v60 = vsub.f32 %v1815_v43, %v1847_v58  ;;  %v1944_v46 = vsub.f32 %v4535_v52, %v1656_v17 }
 0x31d   :  { %v1912_v2 = vmax.f32 %v1880_v23, 0.0  ;;  %v4793_v23 = vld [vmem:[%s5356_s4 + $0x1] ss:$0 sm:$0xff] }
 0x31e   :  { %v1911_v22 = vmax.f32 %v1879_v60, 0.0 }
 0x31f   :  { %1653 = vadd.xlane.f32.xlu1 %v1652_v3  ;;  %v1976_v6 = vadd.f32 0.001, %v1912_v2 }
 0x320   :  { %1650 = vadd.xlane.f32.xlu0 %v1649_v28  ;;  %v1975_v12 = vadd.f32 0.001, %v1911_v22 }
 0x321   :  { %3519 = vrsqrt.f32 %v1976_v6 }
 0x322   :  { %3521 = vrsqrt.f32 %v1975_v12  ;;  %v1570_v45 = vpop.xlane.xlu1 %1569 }
 0x323   :  { %1813 = vadd.xlane.f32.xlu1 %v1812_v37  ;;  %v1658_v10 = vmul.f32 0.015625, %v1570_v45  ;;  %v1567_v24 = vpop.xlane.xlu0 %1566 }
 0x324   :  { %1810 = vadd.xlane.f32.xlu0 %v1809_v50  ;;  %v1657_v61 = vmul.f32 0.015625, %v1567_v24 }
 0x325   :  { %v1850_v18 = vmul.f32 %v1658_v10, %v1658_v10  ;;  %v1946_v45 = vsub.f32 %v4549_v44, %v1658_v10 }
 0x326   :  { %v1730_v14 = vpop.xlane.xlu1 %1729  ;;  %v1849_v32 = vmul.f32 %v1657_v61, %v1657_v61 }
 0x327   :  { %v1818_v25 = vmul.f32 0.015625, %v1730_v14  ;;  %v1727_v20 = vpop.xlane.xlu0 %1726 }
 0x328   :  { %v1817_v9 = vmul.f32 0.015625, %v1727_v20 }
 0x329   :  { %v1882_v1 = vsub.f32 %v1818_v25, %v1850_v18  ;;  %v1945_v18 = vsub.f32 %v4551_v35, %v1657_v61 }
 0x32a   :  { %v1881_v51 = vsub.f32 %v1817_v9, %v1849_v32 }
 0x32b   :  { %v3520_v15 = vpop.eup %3519  ;;  %v1914_v58 = vmax.f32 %v1882_v1, 0.0 }
 0x32c   :  { %v3522_v43 = vpop.eup %3521  ;;  %v2040_v54 = vmul.f32 %v3520_v15, %v1944_v46  ;;  %v1913_v3 = vmax.f32 %v1881_v51, 0.0 }
 0x32d   :  { %v1978_v27 = vadd.f32 0.001, %v1914_v58  ;;  %v2039_v52 = vmul.f32 %v3522_v43, %v1943_v4 }
 0x32e   :  { %v2076_v17 = vmul.f32 %v4788_v36, %v2040_v54  ;;  %v1977_v28 = vadd.f32 0.001, %v1913_v3 }
 0x32f   :  { %3523 = vrsqrt.f32 %v1978_v27  ;;  %v2075_v56 = vmul.f32 %v4788_v36, %v2039_v52 }
 0x330   :  { %v4798_v31 = vadd.f32 %v4793_v23, %v2076_v17  ;;  %3525 = vrsqrt.f32 %v1977_v28 }
 0x331   :  { %v4801_v60 = vadd.f32 %v4793_v23, %v2075_v56 }
 0x332   :  { %v2840_v2 = vmul.f32 -1.442695, %v4798_v31 }
 0x333   :  { %v2839_v22 = vmul.f32 -1.442695, %v4801_v60 }
 0x334   :  { %3527 = vpow2.f32 %v2840_v2 }
 0x335   :  { %3529 = vpow2.f32 %v2839_v22 }
 0x336   :  { %v1576_v6 = vpop.xlane.xlu1 %1575 }
 0x337   :  { %v4805_v37 = vmul.f32 0.015625, %v1576_v6  ;;  %v1573_v12 = vpop.xlane.xlu0 %1572 }
 0x338   :  { %v1659_v50 = vmul.f32 0.015625, %v1573_v12 }
 0x339   :  { %v3524_v14 = vpop.eup %3523  ;;  %v1852_v25 = vmul.f32 %v4805_v37, %v4805_v37 }
 0x33a   :  { %v1736_v24 = vpop.xlane.xlu1 %1735  ;;  %v3526_v9 = vpop.eup %3525  ;;  %v1851_v1 = vmul.f32 %v1659_v50, %v1659_v50  ;;  %v2042_v51 = vmul.f32 %v3524_v14, %v1946_v45 }
 0x33b   :  { %v1820_v20 = vmul.f32 0.015625, %v1736_v24  ;;  %v1733_v32 = vpop.xlane.xlu0 %1732  ;;  %v2041_v4 = vmul.f32 %v3526_v9, %v1945_v18 }
 0x33c   :  { %v1819_v46 = vmul.f32 0.015625, %v1733_v32  ;;  %v2078_v43 = vmul.f32 %v4788_v36, %v2042_v51 }
 0x33d   :  { %v1884_v15 = vsub.f32 %v1820_v20, %v1852_v25  ;;  %v2077_v44 = vmul.f32 %v4788_v36, %v2041_v4  ;;  %v1947_v4 = vsub.f32 %v4565_v13, %v1659_v50 }
 0x33e   :  { %v1883_v58 = vsub.f32 %v1819_v46, %v1851_v1  ;;  %v3528_v10 = vpop.eup %3527  ;;  %v4814_v35 = vadd.f32 %v4793_v23, %v2078_v43 }
 0x33f   :  { %v1916_v54 = vmax.f32 %v1884_v15, 0.0  ;;  %v3530_v61 = vpop.eup %3529  ;;  %v2240_v27 = vadd.f32 1.0, %v3528_v10  ;;  %v4817_v17 = vadd.f32 %v4793_v23, %v2077_v44  ;;  %v1948_v15 = vsub.f32 %v4563_v34, %v4805_v37 }
 0x340   :  { %v1915_v3 = vmax.f32 %v1883_v58, 0.0  ;;  %v2239_v56 = vadd.f32 1.0, %v3530_v61  ;;  %v2842_v22 = vmul.f32 -1.442695, %v4814_v35 }
 0x341   :  { %v1980_v52 = vadd.f32 0.001, %v1916_v54  ;;  %3531 = vrcp.f32 %v2240_v27  ;;  %v2841_v2 = vmul.f32 -1.442695, %v4817_v17 }
 0x342   :  { %v1979_v28 = vadd.f32 0.001, %v1915_v3 }
 0x343   :  { %3533 = vrsqrt.f32 %v1980_v52 }
 0x344   :  { %3535 = vrsqrt.f32 %v1979_v28 }
 0x345   :  { %3537 = vrcp.f32 %v2239_v56 }
 0x346   :  { %v1582_v6 = vpop.xlane.xlu1 %1581  ;;  %3539 = vpow2.f32 %v2841_v2 }
 0x347   :  { %v4821_v12 = vmul.f32 0.015625, %v1582_v6  ;;  %v1579_v45 = vpop.xlane.xlu0 %1578  ;;  %3541 = vpow2.f32 %v2842_v22 }
 0x348   :  { %v4823_v24 = vmul.f32 0.015625, %v1579_v45 }
 0x349   :  { %v1854_v18 = vmul.f32 %v4821_v12, %v4821_v12 }
 0x34a   :  { %v1742_v14 = vpop.xlane.xlu1 %1741  ;;  %v1853_v32 = vmul.f32 %v4823_v24, %v4823_v24 }
 0x34b   :  { %v1822_v25 = vmul.f32 0.015625, %v1742_v14  ;;  %v1739_v20 = vpop.xlane.xlu0 %1738  ;;  %v3532_v1 = vpop.eup %3531 }
 0x34c   :  { %v1821_v9 = vmul.f32 0.015625, %v1739_v20  ;;  %v2336_v45 = vmul.f32 %v3532_v1, %v4798_v31 }
 0x34d   :  { %v1886_v46 = vsub.f32 %v1822_v25, %v1854_v18  ;;  %v3534_v51 = vpop.eup %3533 }
 0x34e   :  { %v1885_v58 = vsub.f32 %v1821_v9, %v1853_v32  ;;  %v3536_v54 = vpop.eup %3535  ;;  %v2044_v56 = vmul.f32 %v3534_v51, %v1948_v15 }
 0x34f   :  { %v1588_v43 = vpop.xlane.xlu1 %1587  ;;  %v1918_v44 = vmax.f32 %v1886_v46, 0.0  ;;  %v3538_v61 = vpop.eup %3537  ;;  %v2043_v28 = vmul.f32 %v3536_v54, %v1947_v4 }
 0x350   :  { %v4832_v10 = vmul.f32 0.015625, %v1588_v43  ;;  %v1585_v3 = vpop.xlane.xlu0 %1584  ;;  %v1917_v27 = vmax.f32 %v1885_v58, 0.0  ;;  %v3540_v2 = vpop.eup %3539  ;;  %v2335_v6 = vmul.f32 %v3538_v61, %v4801_v60  ;;  %v2080_v46 = vmul.f32 %v4788_v36, %v2044_v56 }
 0x351   :  { %v4834_v52 = vmul.f32 0.015625, %v1585_v3  ;;  %v1982_v22 = vadd.f32 0.001, %v1918_v44  ;;  %v3542_v34 = vpop.eup %3541  ;;  %v2241_v14 = vadd.f32 1.0, %v3540_v2  ;;  %v2079_v32 = vmul.f32 %v4788_v36, %v2043_v28 }
 0x352   :  { %v1981_v37 = vadd.f32 0.001, %v1917_v27  ;;  %v1856_v13 = vmul.f32 %v4832_v10, %v4832_v10  ;;  %3235 = vmatprep.mubr.msk.f32.mxu0 %vm418_vm1, %v2335_v6  ;;  %v2242_v20 = vadd.f32 1.0, %v3542_v34  ;;  %v4850_v15 = vadd.f32 %v4793_v23, %v2080_v46 }
 0x353   :  { %v1748_v50 = vpop.xlane.xlu1 %1747  ;;  %3543 = vrsqrt.f32 %v1982_v22  ;;  %v1855_v60 = vmul.f32 %v4834_v52, %v4834_v52  ;;  %3236 = vmatmul.mubr.msk.f32.vlgmr.msra.gmra.mrb[16].mxu0 %vm418_vm1, %v2336_v45  ;;  %v4847_v31 = vadd.f32 %v4793_v23, %v2079_v32  ;;  %v1950_v27 = vsub.f32 %v4577_v48, %v4821_v12 }
 0x354   :  { %v1824_v18 = vmul.f32 0.015625, %v1748_v50  ;;  %v1745_v25 = vpop.xlane.xlu0 %1744  ;;  %3545 = vrsqrt.f32 %v1981_v37  ;;  %v2844_v54 = vmul.f32 -1.442695, %v4850_v15  ;;  %v1949_v22 = vsub.f32 %v4579_v39, %v4823_v24 }
 0x355   :  { %v1823_v9 = vmul.f32 0.015625, %v1745_v25  ;;  %3547 = vrcp.f32 %v2241_v14  ;;  %v2843_v58 = vmul.f32 -1.442695, %v4847_v31 }
 0x356   :  { %v1888_v51 = vsub.f32 %v1824_v18, %v1856_v13  ;;  %3549 = vrcp.f32 %v2242_v20 }
 0x357   :  { %v1887_v1 = vsub.f32 %v1823_v9, %v1855_v60  ;;  %3551 = vpow2.f32 %v2843_v58 }
 0x358   :  { %v1920_v4 = vmax.f32 %v1888_v51, 0.0  ;;  %3553 = vpow2.f32 %v2844_v54 }
 0x359   :  { %v1919_v43 = vmax.f32 %v1887_v1, 0.0 }
 0x35a   :  { %v1984_v44 = vadd.f32 0.001, %v1920_v4 }
 0x35b   :  { %v1983_v3 = vadd.f32 0.001, %v1919_v43 }
 0x35c   :  { %3555 = vrsqrt.f32 %v1984_v44  ;;  %v1594_v61 = vpop.xlane.xlu1 %1593 }
 0x35d   :  { %3557 = vrsqrt.f32 %v1983_v3  ;;  %v4856_v28 = vmul.f32 0.015625, %v1594_v61  ;;  %v1591_v56 = vpop.xlane.xlu0 %1590  ;;  %v3544_v2 = vpop.eup %3543  ;;  %v1952_v61 = vsub.f32 %v4591_v0, %v4832_v10 }
 0x35e   :  { %v4860_v6 = vmul.f32 0.015625, %v1591_v56  ;;  %v3546_v34 = vpop.eup %3545  ;;  %v2046_v37 = vmul.f32 %v3544_v2, %v1950_v27 }
 0x35f   :  { %v3548_v13 = vpop.eup %3547  ;;  %v2045_v45 = vmul.f32 %v3546_v34, %v1949_v22  ;;  %v1858_v18 = vmul.f32 %v4856_v28, %v4856_v28  ;;  %v1951_v34 = vsub.f32 %v4593_v11, %v4834_v52 }
 0x360   :  { %v1754_v50 = vpop.xlane.xlu1 %1753  ;;  %v3550_v14 = vpop.eup %3549  ;;  %v2337_v25 = vmul.f32 %v3548_v13, %v4817_v17  ;;  %v2082_v20 = vmul.f32 %v4788_v36, %v2046_v37  ;;  %v1857_v39 = vmul.f32 %v4860_v6, %v4860_v6 }
 0x361   :  { %v1826_v48 = vmul.f32 0.015625, %v1754_v50  ;;  %v1751_v12 = vpop.xlane.xlu0 %1750  ;;  %v2338_v32 = vmul.f32 %v3550_v14, %v4814_v35  ;;  %v2081_v60 = vmul.f32 %v4788_v36, %v2045_v45  ;;  %v3552_v46 = vpop.eup %3551 }
 0x362   :  { %v1825_v24 = vmul.f32 0.015625, %v1751_v12  ;;  %3238 = vmatprep.mubr.msk.f32.mxu0 %vm418_vm1, %v2337_v25  ;;  %v4876_v4 = vadd.f32 %v4793_v23, %v2082_v20  ;;  %v3554_v58 = vpop.eup %3553  ;;  %v2243_v44 = vadd.f32 1.0, %v3552_v46 }
 0x363   :  { %v1890_v9 = vsub.f32 %v1826_v48, %v1858_v18  ;;  %3239 = vmatmul.mubr.msk.f32.gmra.mrb[18].mxu0 %vm418_vm1, %v2338_v32  ;;  %v4873_v17 = vadd.f32 %v4793_v23, %v2081_v60  ;;  %v2244_v2 = vadd.f32 1.0, %v3554_v58 }
 0x364   :  { %v1889_v51 = vsub.f32 %v1825_v24, %v1857_v39  ;;  %v1600_v1 = vpop.xlane.xlu1 %1599  ;;  %3559 = vrcp.f32 %v2243_v44  ;;  %v2846_v0 = vmul.f32 -1.442695, %v4876_v4 }
 0x365   :  { %v1922_v43 = vmax.f32 %v1890_v9, 0.0  ;;  %v4878_v54 = vmul.f32 0.015625, %v1600_v1  ;;  %v1597_v35 = vpop.xlane.xlu0 %1596  ;;  %v2845_v13 = vmul.f32 -1.442695, %v4873_v17  ;;  %3561 = vrcp.f32 %v2244_v2 }
 0x366   :  { %v3556_v3 = vpop.eup %3555  ;;  %v1921_v27 = vmax.f32 %v1889_v51, 0.0  ;;  %v4882_v56 = vmul.f32 0.015625, %v1597_v35 }
 0x367   :  { %v3558_v22 = vpop.eup %3557  ;;  %v1986_v37 = vadd.f32 0.001, %v1922_v43  ;;  %v1860_v45 = vmul.f32 %v4878_v54, %v4878_v54  ;;  %v2048_v12 = vmul.f32 %v3556_v3, %v1952_v61 }
 0x368   :  { %v1985_v50 = vadd.f32 0.001, %v1921_v27  ;;  %v1760_v14 = vpop.xlane.xlu1 %1759  ;;  %v2047_v48 = vmul.f32 %v3558_v22, %v1951_v34  ;;  %v1859_v11 = vmul.f32 %v4882_v56, %v4882_v56  ;;  %v1954_v22 = vsub.f32 %v4617_v57, %v4856_v28 }
 0x369   :  { %3563 = vrsqrt.f32 %v1986_v37  ;;  %v1828_v10 = vmul.f32 0.015625, %v1760_v14  ;;  %v1757_v18 = vpop.xlane.xlu0 %1756  ;;  %v2084_v39 = vmul.f32 %v4788_v36, %v2048_v12 }
 0x36a   :  { %3565 = vrsqrt.f32 %v1985_v50  ;;  %v1827_v52 = vmul.f32 0.015625, %v1757_v18  ;;  %v2083_v20 = vmul.f32 %v4788_v36, %v2047_v48  ;;  %v1953_v18 = vsub.f32 %v4619_v26, %v4860_v6 }
 0x36b   :  { %v1892_v25 = vsub.f32 %v1828_v10, %v1860_v45  ;;  %3567 = vpow2.f32 %v2845_v13  ;;  %v4900_v1 = vadd.f32 %v4793_v23, %v2084_v39 }
 0x36c   :  { %v1891_v24 = vsub.f32 %v1827_v52, %v1859_v11  ;;  %v1606_v32 = vpop.xlane.xlu1 %1605  ;;  %3569 = vpow2.f32 %v2846_v0  ;;  %v4897_v51 = vadd.f32 %v4793_v23, %v2083_v20 }
 0x36d   :  { %v1924_v60 = vmax.f32 %v1892_v25, 0.0  ;;  %v4894_v9 = vmul.f32 0.015625, %v1606_v32  ;;  %v1603_v46 = vpop.xlane.xlu0 %1602  ;;  %v2848_v27 = vmul.f32 -1.442695, %v4900_v1 }
 0x36e   :  { %v1923_v58 = vmax.f32 %v1891_v24, 0.0  ;;  %v4902_v43 = vmul.f32 0.015625, %v1603_v46  ;;  %v2847_v44 = vmul.f32 -1.442695, %v4897_v51  ;;  %v3560_v2 = vpop.eup %3559 }
 0x36f   :  { %v1988_v35 = vadd.f32 0.001, %v1924_v60  ;;  %v1862_v34 = vmul.f32 %v4894_v9, %v4894_v9  ;;  %v3562_v50 = vpop.eup %3561  ;;  %v2339_v0 = vmul.f32 %v3560_v2, %v4847_v31 }
 0x370   :  { %v1987_v3 = vadd.f32 0.001, %v1923_v58  ;;  %v1766_v61 = vpop.xlane.xlu1 %1765  ;;  %v1861_v45 = vmul.f32 %v4902_v43, %v4902_v43  ;;  %v2340_v57 = vmul.f32 %v3562_v50, %v4850_v15  ;;  %v1956_v50 = vsub.f32 %v4630_v42, %v4878_v54 }
 0x371   :  { %3571 = vrsqrt.f32 %v1988_v35  ;;  %v1830_v37 = vmul.f32 0.015625, %v1766_v61  ;;  %v1763_v13 = vpop.xlane.xlu0 %1762  ;;  %3241 = vmatprep.mubr.msk.f32.mxu0 %vm418_vm1, %v2339_v0 }
 0x372   :  { %3573 = vrsqrt.f32 %v1987_v3  ;;  %v1829_v14 = vmul.f32 0.015625, %v1763_v13  ;;  %3242 = vmatmul.mubr.msk.f32.gmra.mrb[20].mxu0 %vm418_vm1, %v2340_v57 }
 0x373   :  { %v3564_v10 = vpop.eup %3563  ;;  %v1894_v48 = vsub.f32 %v1830_v37, %v1862_v34  ;;  %3575 = vpow2.f32 %v2847_v44 }
 0x374   :  { %v3566_v28 = vpop.eup %3565  ;;  %v1893_v12 = vsub.f32 %v1829_v14, %v1861_v45  ;;  %v1612_v11 = vpop.xlane.xlu1 %1611  ;;  %3577 = vpow2.f32 %v2848_v27  ;;  %v2050_v52 = vmul.f32 %v3564_v10, %v1954_v22  ;;  %v1955_v10 = vsub.f32 %v4633_v38, %v4882_v56 }
 0x375   :  { %v3568_v25 = vpop.eup %3567  ;;  %v1926_v20 = vmax.f32 %v1894_v48, 0.0  ;;  %v4917_v39 = vmul.f32 0.015625, %v1612_v11  ;;  %v1609_v31 = vpop.xlane.xlu0 %1608  ;;  %v2049_v24 = vmul.f32 %v3566_v28, %v1953_v18  ;;  %v1958_v38 = vsub.f32 %v4657_v63, %v4894_v9 }
 0x376   :  { %v3570_v26 = vpop.eup %3569  ;;  %v1925_v6 = vmax.f32 %v1893_v12, 0.0  ;;  %v4920_v32 = vmul.f32 0.015625, %v1609_v31  ;;  %v2245_v15 = vadd.f32 1.0, %v3568_v25  ;;  %v2086_v60 = vmul.f32 %v4788_v36, %v2050_v52 }
 0x377   :  { %v1990_v46 = vadd.f32 0.001, %v1926_v20  ;;  %v2246_v58 = vadd.f32 1.0, %v3570_v26  ;;  %v1864_v44 = vmul.f32 %v4917_v39, %v4917_v39  ;;  %v2085_v2 = vmul.f32 %v4788_v36, %v2049_v24 }
 0x378   :  { %v1989_v35 = vadd.f32 0.001, %v1925_v6  ;;  %v1772_v3 = vpop.xlane.xlu1 %1771  ;;  %3579 = vrcp.f32 %v2245_v15  ;;  %v4927_v22 = vadd.f32 %v4793_v23, %v2086_v60  ;;  %v1863_v34 = vmul.f32 %v4920_v32, %v4920_v32 }
 0x379   :  { %3581 = vrsqrt.f32 %v1990_v46  ;;  %v1832_v61 = vmul.f32 0.015625, %v1772_v3  ;;  %v1769_v27 = vpop.xlane.xlu0 %1768  ;;  %v4937_v57 = vadd.f32 %v4793_v23, %v2085_v2  ;;  %v1957_v63 = vsub.f32 %v4659_v55, %v4902_v43 }
 0x37a   :  { %3583 = vrsqrt.f32 %v1989_v35  ;;  %v1831_v37 = vmul.f32 0.015625, %v1769_v27  ;;  %v2850_v14 = vmul.f32 -1.442695, %v4927_v22 }
 0x37b   :  { %v3572_v13 = vpop.eup %3571  ;;  %v1896_v45 = vsub.f32 %v1832_v61, %v1864_v44  ;;  %3585 = vrcp.f32 %v2246_v58  ;;  %v2849_v46 = vmul.f32 -1.442695, %v4937_v57 }
 0x37c   :  { %v3574_v0 = vpop.eup %3573  ;;  %v1895_v18 = vsub.f32 %v1831_v37, %v1863_v34  ;;  %v1618_v48 = vpop.xlane.xlu1 %1617  ;;  %3587 = vpow2.f32 %v2850_v14  ;;  %v2052_v42 = vmul.f32 %v3572_v13, %v1956_v50 }
 0x37d   :  { %v3576_v28 = vpop.eup %3575  ;;  %v1928_v12 = vmax.f32 %v1896_v45, 0.0  ;;  %v4939_v11 = vmul.f32 0.015625, %v1618_v48  ;;  %v1615_v52 = vpop.xlane.xlu0 %1614  ;;  %v2051_v24 = vmul.f32 %v3574_v0, %v1955_v10 }
 0x37e   :  { %v3578_v54 = vpop.eup %3577  ;;  %v1927_v25 = vmax.f32 %v1895_v18, 0.0  ;;  %v4941_v20 = vmul.f32 0.015625, %v1615_v52  ;;  %v2247_v31 = vadd.f32 1.0, %v3576_v28  ;;  %v2088_v3 = vmul.f32 %v4788_v36, %v2052_v42 }
 0x37f   :  { %v1992_v56 = vadd.f32 0.001, %v1928_v12  ;;  %v2248_v26 = vadd.f32 1.0, %v3578_v54  ;;  %v1866_v15 = vmul.f32 %v4939_v11, %v4939_v11  ;;  %v2087_v44 = vmul.f32 %v4788_v36, %v2051_v24 }
 0x380   :  { %v1991_v6 = vadd.f32 0.001, %v1927_v25  ;;  %v1778_v60 = vpop.xlane.xlu1 %1777  ;;  %3589 = vrcp.f32 %v2247_v31  ;;  %v1865_v9 = vmul.f32 %v4941_v20, %v4941_v20  ;;  %v4959_v0 = vadd.f32 %v4793_v23, %v2088_v3 }
 0x381   :  { %3591 = vrsqrt.f32 %v1992_v56  ;;  %v1834_v58 = vmul.f32 0.015625, %v1778_v60  ;;  %v1775_v35 = vpop.xlane.xlu0 %1774  ;;  %v4956_v13 = vadd.f32 %v4793_v23, %v2087_v44  ;;  %v1960_v31 = vsub.f32 %v4667_v21, %v4917_v39 }
 0x382   :  { %v3580_v61 = vpop.eup %3579  ;;  %3593 = vrsqrt.f32 %v1991_v6  ;;  %v1833_v27 = vmul.f32 0.015625, %v1775_v35  ;;  %v1959_v21 = vsub.f32 %v4671_v47, %v4920_v32 }
 0x383   :  { %v3582_v2 = vpop.eup %3581  ;;  %v1898_v34 = vsub.f32 %v1834_v58, %v1866_v15  ;;  %v2341_v37 = vmul.f32 %v3580_v61, %v4873_v17  ;;  %3595 = vrcp.f32 %v2248_v26  ;;  %v2851_v17 = vmul.f32 -1.442695, %v4956_v13 }
 0x384   :  { %v3584_v50 = vpop.eup %3583  ;;  %v1897_v45 = vsub.f32 %v1833_v27, %v1865_v9  ;;  %v1624_v14 = vpop.xlane.xlu1 %1623  ;;  %3597 = vpow2.f32 %v2849_v46  ;;  %v2054_v55 = vmul.f32 %v3582_v2, %v1958_v38  ;;  %v2852_v26 = vmul.f32 -1.442695, %v4959_v0 }
 0x385   :  { %v3586_v43 = vpop.eup %3585  ;;  %v1930_v10 = vmax.f32 %v1898_v34, 0.0  ;;  %3244 = vmatprep.mubr.msk.f32.mxu0 %vm418_vm1, %v2341_v37  ;;  %v4962_v18 = vmul.f32 0.015625, %v1624_v14  ;;  %v1621_v48 = vpop.xlane.xlu0 %1620  ;;  %v2053_v28 = vmul.f32 %v3584_v50, %v1957_v63  ;;  %3599 = vpow2.f32 %v2851_v17 }
 0x386   :  { %v1929_v12 = vmax.f32 %v1897_v45, 0.0  ;;  %v2342_v52 = vmul.f32 %v3586_v43, %v4876_v4  ;;  %v4966_v42 = vmul.f32 0.015625, %v1621_v48  ;;  %v3588_v54 = vpop.eup %3587  ;;  %v2090_v60 = vmul.f32 %v4788_v36, %v2054_v55 }
 0x387   :  { %v1994_v25 = vadd.f32 0.001, %v1930_v10  ;;  %v1868_v38 = vmul.f32 %v4962_v18, %v4962_v18  ;;  %v2089_v15 = vmul.f32 %v4788_v36, %v2053_v28  ;;  %v2250_v35 = vadd.f32 1.0, %v3588_v54 }
 0x388   :  { %v1993_v24 = vadd.f32 0.001, %v1929_v12  ;;  %3245 = vmatmul.mubr.msk.f32.gmra.mrb[22].mxu0 %vm418_vm1, %v2342_v52  ;;  %v1784_v56 = vpop.xlane.xlu1 %1783  ;;  %v1867_v39 = vmul.f32 %v4966_v42, %v4966_v42  ;;  %v4985_v34 = vadd.f32 %v4793_v23, %v2090_v60  ;;  %v1962_v17 = vsub.f32 %v4675_v49, %v4939_v11 }
 0x389   :  { %3601 = vrsqrt.f32 %v1994_v25  ;;  %v1836_v6 = vmul.f32 0.015625, %v1784_v56  ;;  %v1781_v4 = vpop.xlane.xlu0 %1780  ;;  %v4982_v63 = vadd.f32 %v4793_v23, %v2089_v15 }
 0x38a   :  { %v3590_v46 = vpop.eup %3589  ;;  %v1835_v58 = vmul.f32 0.015625, %v1781_v4  ;;  %3603 = vrsqrt.f32 %v1993_v24 }
 0x38b   :  { %v3592_v44 = vpop.eup %3591  ;;  %v1900_v3 = vsub.f32 %v1836_v6, %v1868_v38  ;;  %v2343_v61 = vmul.f32 %v3590_v46, %v4897_v51  ;;  %3605 = vpow2.f32 %v2852_v26  ;;  %v2853_v51 = vmul.f32 -1.442695, %v4982_v63 }
 0x38c   :  { %v3594_v9 = vpop.eup %3593  ;;  %v1899_v27 = vsub.f32 %v1835_v58, %v1867_v39  ;;  %v1630_v2 = vpop.xlane.xlu1 %1629  ;;  %v2056_v47 = vmul.f32 %v3592_v44, %v1960_v31  ;;  %3607 = vrcp.f32 %v2250_v35  ;;  %v2854_v31 = vmul.f32 -1.442695, %v4985_v34 }
 0x38d   :  { %v3596_v32 = vpop.eup %3595  ;;  %v1932_v37 = vmax.f32 %v1900_v3, 0.0  ;;  %v4987_v50 = vmul.f32 0.015625, %v1630_v2  ;;  %v1627_v45 = vpop.xlane.xlu0 %1626  ;;  %3247 = vmatprep.mubr.msk.f32.mxu0 %vm418_vm1, %v2343_v61  ;;  %v2055_v14 = vmul.f32 %v3594_v9, %v1959_v21  ;;  %3609 = vpow2.f32 %v2853_v51 }
 0x38e   :  { %v3598_v55 = vpop.eup %3597  ;;  %v1931_v43 = vmax.f32 %v1899_v27, 0.0  ;;  %v4991_v10 = vmul.f32 0.015625, %v1627_v45  ;;  %v2344_v48 = vmul.f32 %v3596_v32, %v4900_v1  ;;  %v2092_v49 = vmul.f32 %v4788_v36, %v2056_v47 }
 0x38f   :  { %v1996_v28 = vadd.f32 0.001, %v1932_v37  ;;  %v2249_v12 = vadd.f32 1.0, %v3598_v55  ;;  %v1870_v54 = vmul.f32 %v4987_v50, %v4987_v50  ;;  %v3600_v24 = vpop.eup %3599  ;;  %v2091_v56 = vmul.f32 %v4788_v36, %v2055_v14 }
 0x390   :  { %v1995_v52 = vadd.f32 0.001, %v1931_v43  ;;  %v1790_v25 = vpop.xlane.xlu1 %1789  ;;  %3248 = vmatmul.mubr.msk.f32.gmra.mrb[24].mxu0 %vm418_vm1, %v2344_v48  ;;  %v1869_v11 = vmul.f32 %v4991_v10, %v4991_v10  ;;  %v2251_v6 = vadd.f32 1.0, %v3600_v24  ;;  %v5008_v39 = vadd.f32 %v4793_v23, %v2092_v49 }
 0x391   :  { %3611 = vrsqrt.f32 %v1996_v28  ;;  %v1838_v38 = vmul.f32 0.015625, %v1790_v25  ;;  %v1787_v1 = vpop.xlane.xlu0 %1786  ;;  %v5005_v60 = vadd.f32 %v4793_v23, %v2091_v56  ;;  %v1961_v32 = vsub.f32 %v4677_v33, %v4941_v20 }
 0x392   :  { %3613 = vrsqrt.f32 %v1995_v52  ;;  %v1837_v26 = vmul.f32 0.015625, %v1787_v1  ;;  %v2856_v43 = vmul.f32 -1.442695, %v5008_v39  ;;  %v1964_v33 = vsub.f32 %v4687_v40, %v4962_v18 }
 0x393   :  { %v3602_v4 = vpop.eup %3601  ;;  %v1902_v15 = vsub.f32 %v1838_v38, %v1870_v54  ;;  %3615 = vrcp.f32 %v2249_v12  ;;  %v2855_v9 = vmul.f32 -1.442695, %v5005_v60  ;;  %v1963_v49 = vsub.f32 %v4689_v62, %v4966_v42 }
 0x394   :  { %v1901_v46 = vsub.f32 %v1837_v26, %v1869_v11  ;;  %v1636_v21 = vpop.xlane.xlu1 %1635  ;;  %3617 = vrcp.f32 %v2251_v6  ;;  %v2058_v58 = vmul.f32 %v3602_v4, %v1962_v17  ;;  %v3604_v35 = vpop.eup %3603 }
 0x395   :  { %v1934_v44 = vmax.f32 %v1902_v15, 0.0  ;;  %v5010_v3 = vmul.f32 0.015625, %v1636_v21  ;;  %v1633_v61 = vpop.xlane.xlu0 %1632  ;;  %3619 = vpow2.f32 %v2854_v31  ;;  %v3606_v27 = vpop.eup %3605  ;;  %v2057_v12 = vmul.f32 %v3604_v35, %v1961_v32 }
 0x396   :  { %v1933_v2 = vmax.f32 %v1901_v46, 0.0  ;;  %v5013_v47 = vmul.f32 0.015625, %v1633_v61  ;;  %v2252_v45 = vadd.f32 1.0, %v3606_v27  ;;  %3621 = vpow2.f32 %v2855_v9  ;;  %v3608_v48 = vpop.eup %3607 }
 0x397   :  { %v1998_v37 = vadd.f32 0.001, %v1934_v44  ;;  %v1872_v14 = vmul.f32 %v5010_v3, %v5010_v3  ;;  %v2094_v52 = vmul.f32 %v4788_v36, %v2058_v58  ;;  %v3610_v54 = vpop.eup %3609  ;;  %v2093_v1 = vmul.f32 %v4788_v36, %v2057_v12 }
 0x398   :  { %v1997_v51 = vadd.f32 0.001, %v1933_v2  ;;  %v1796_v55 = vpop.xlane.xlu1 %1795  ;;  %v1871_v20 = vmul.f32 %v5013_v47, %v5013_v47  ;;  %v2253_v38 = vadd.f32 1.0, %v3610_v54  ;;  %v1966_v61 = vsub.f32 %v4693_v16, %v4987_v50 }
 0x399   :  { %3623 = vrsqrt.f32 %v1998_v37  ;;  %v1840_v17 = vmul.f32 0.015625, %v1796_v55  ;;  %v1793_v28 = vpop.xlane.xlu0 %1792  ;;  %v5029_v40 = vadd.f32 %v4793_v23, %v2094_v52  ;;  %v5034_v46 = vadd.f32 %v4793_v23, %v2093_v1 }
 0x39a   :  { %3625 = vrsqrt.f32 %v1997_v51  ;;  %v1839_v25 = vmul.f32 0.015625, %v1793_v28  ;;  %v2346_v27 = vmul.f32 %v3608_v48, %v4927_v22 }
 0x39b   :  { %v3612_v31 = vpop.eup %3611  ;;  %v1904_v24 = vsub.f32 %v1840_v17, %v1872_v14  ;;  %3627 = vrcp.f32 %v2252_v45  ;;  %v2858_v51 = vmul.f32 -1.442695, %v5029_v40  ;;  %v2857_v50 = vmul.f32 -1.442695, %v5034_v46 }
 0x39c   :  { %v3614_v56 = vpop.eup %3613  ;;  %v1903_v11 = vsub.f32 %v1839_v25, %v1871_v20  ;;  %v1642_v26 = vpop.xlane.xlu1 %1641  ;;  %3629 = vpow2.f32 %v2856_v43  ;;  %v2060_v42 = vmul.f32 %v3612_v31, %v1964_v33 }
 0x39d   :  { %v3616_v18 = vpop.eup %3615  ;;  %v1936_v6 = vmax.f32 %v1904_v24, 0.0  ;;  %v5031_v4 = vmul.f32 0.015625, %v1642_v26  ;;  %v1639_v15 = vpop.xlane.xlu0 %1638  ;;  %3631 = vrcp.f32 %v2253_v38  ;;  %v2059_v22 = vmul.f32 %v3614_v56, %v1963_v49 }
 0x39e   :  { %v3618_v21 = vpop.eup %3617  ;;  %v2345_v58 = vmul.f32 %v3616_v18, %v4937_v57  ;;  %v1935_v35 = vmax.f32 %v1903_v11, 0.0  ;;  %v5037_v62 = vmul.f32 0.015625, %v1639_v15  ;;  %v2096_v48 = vmul.f32 %v4788_v36, %v2060_v42 }
 0x39f   :  { %v3620_v44 = vpop.eup %3619  ;;  %v2000_v9 = vadd.f32 0.001, %v1936_v6  ;;  %v2347_v2 = vmul.f32 %v3618_v21, %v4956_v13  ;;  %v1874_v37 = vmul.f32 %v5031_v4, %v5031_v4  ;;  %v2095_v52 = vmul.f32 %v4788_v36, %v2059_v22 }
 0x3a0   :  { %3250 = vmatprep.mubr.msk.f32.mxu0 %vm418_vm1, %v2345_v58  ;;  %v1999_v32 = vadd.f32 0.001, %v1935_v35  ;;  %v1802_v57 = vpop.xlane.xlu1 %1801  ;;  %v2254_v45 = vadd.f32 1.0, %v3620_v44  ;;  %v3622_v55 = vpop.eup %3621  ;;  %v1873_v13 = vmul.f32 %v5037_v62, %v5037_v62  ;;  %v5055_v25 = vadd.f32 %v4793_v23, %v2096_v48 }
 0x3a1   :  { %3633 = vrsqrt.f32 %v2000_v9  ;;  %3251 = vmatmul.mubr.msk.f32.gmra.mrb[26].mxu0 %vm418_vm1, %v2346_v27  ;;  %v1842_v14 = vmul.f32 0.015625, %v1802_v57  ;;  %v1799_v16 = vpop.xlane.xlu0 %1798  ;;  %v2255_v12 = vadd.f32 1.0, %v3622_v55  ;;  %v5060_v49 = vadd.f32 %v4793_v23, %v2095_v52 }
 0x3a2   :  { %3635 = vrsqrt.f32 %v1999_v32  ;;  %3253 = vmatprep.mubr.msk.f32.mxu0 %vm418_vm1, %v2347_v2  ;;  %v1841_v43 = vmul.f32 0.015625, %v1799_v16  ;;  %v1965_v21 = vsub.f32 %v4695_v59, %v4991_v10  ;;  %v2860_v59 = vmul.f32 -1.442695, %v5055_v25 }
 0x3a3   :  { %v3624_v17 = vpop.eup %3623  ;;  %v1906_v28 = vsub.f32 %v1842_v14, %v1874_v37  ;;  %3637 = vrcp.f32 %v2254_v45  ;;  %v2859_v32 = vmul.f32 -1.442695, %v5060_v49 }
 0x3a4   :  { %v3626_v54 = vpop.eup %3625  ;;  %v1905_v33 = vsub.f32 %v1841_v43, %v1873_v13  ;;  %v1648_v20 = vpop.xlane.xlu1 %1647  ;;  %3639 = vpow2.f32 %v2857_v50  ;;  %v2062_v31 = vmul.f32 %v3624_v17, %v1966_v61 }
 0x3a5   :  { %v3628_v24 = vpop.eup %3627  ;;  %v1938_v38 = vmax.f32 %v1906_v28, 0.0  ;;  %v5057_v1 = vmul.f32 0.015625, %v1648_v20  ;;  %v1645_v56 = vpop.xlane.xlu0 %1644  ;;  %3641 = vrcp.f32 %v2255_v12  ;;  %v2061_v37 = vmul.f32 %v3626_v54, %v1965_v21  ;;  %v5107_v21 = vld [vmem:[%s5356_s4] ss:$0 sm:$0xff] }
 0x3a6   :  { %v3630_v11 = vpop.eup %3629  ;;  %v2348_v26 = vmul.f32 %v3628_v24, %v4959_v0  ;;  %v1937_v18 = vmax.f32 %v1905_v33, 0.0  ;;  %v5063_v6 = vmul.f32 0.015625, %v1645_v56  ;;  %3643 = vpow2.f32 %v2858_v51 }
 0x3a7   :  { %v3632_v15 = vpop.eup %3631  ;;  %v2002_v58 = vadd.f32 0.001, %v1938_v38  ;;  %v2256_v35 = vadd.f32 1.0, %v3630_v11  ;;  %v1876_v44 = vmul.f32 %v5057_v1, %v5057_v1  ;;  %v2098_v57 = vmul.f32 %v4788_v36, %v2062_v31 }
 0x3a8   :  { %3254 = vmatmul.mubr.msk.f32.gmra.mrb[28].mxu0 %vm418_vm1, %v2348_v26  ;;  %v2001_v42 = vadd.f32 0.001, %v1937_v18  ;;  %v1875_v61 = vmul.f32 %v5063_v6, %v5063_v6  ;;  %v2349_v0 = vmul.f32 %v3632_v15, %v4982_v63  ;;  %v1808_v9 = vpop.xlane.xlu1 %1807  ;;  %v1967_v51 = vsub.f32 %v4707_v7, %v5013_v47 }
 0x3a9   :  { %3645 = vrsqrt.f32 %v2002_v58  ;;  %v1844_v27 = vmul.f32 0.015625, %v1808_v9  ;;  %v1805_v2 = vpop.xlane.xlu0 %1804  ;;  %v2097_v22 = vmul.f32 %v4788_v36, %v2061_v37  ;;  %v5081_v55 = vadd.f32 %v4793_v23, %v2098_v57  ;;  %v5115_v9 = vld [vmem:[%s5356_s4 + $0x1] ss:$0 sm:$0xff] }
 0x3aa   :  { %3647 = vrsqrt.f32 %v2001_v42  ;;  %3256 = vmatprep.mubr.msk.f32.mxu0 %vm418_vm1, %v2349_v0  ;;  %v1843_v10 = vmul.f32 0.015625, %v1805_v2  ;;  %v1968_v33 = vsub.f32 %v4705_v53, %v5010_v3  ;;  %v1970_v20 = vsub.f32 %v4711_v8, %v5031_v4 }
 0x3ab   :  { %v3634_v45 = vpop.eup %3633  ;;  %v1908_v63 = vsub.f32 %v1844_v27, %v1876_v44  ;;  %3649 = vrcp.f32 %v2256_v35  ;;  %v5089_v54 = vadd.f32 %v4793_v23, %v2097_v22  ;;  %v2862_v15 = vmul.f32 -1.442695, %v5081_v55 }
 0x3ac   :  { %v3636_v14 = vpop.eup %3635  ;;  %v1907_v16 = vsub.f32 %v1843_v10, %v1875_v61  ;;  %v1654_v50 = vpop.xlane.xlu1 %1653  ;;  %3651 = vpow2.f32 %v2859_v32  ;;  %v1969_v35 = vsub.f32 %v4713_v5, %v5037_v62  ;;  %v2064_v44 = vmul.f32 %v3634_v45, %v1968_v33 }
 0x3ad   :  { %v3638_v13 = vpop.eup %3637  ;;  %v1940_v43 = vmax.f32 %v1908_v63, 0.0  ;;  %v5083_v48 = vmul.f32 0.015625, %v1654_v50  ;;  %v1651_v17 = vpop.xlane.xlu0 %1650  ;;  %3653 = vpow2.f32 %v2860_v59  ;;  %v2063_v28 = vmul.f32 %v3636_v14, %v1967_v51 }
 0x3ae   :  { %v3640_v12 = vpop.eup %3639  ;;  %v2350_v7 = vmul.f32 %v3638_v13, %v4985_v34  ;;  %v1939_v47 = vmax.f32 %v1907_v16, 0.0  ;;  %v5086_v52 = vmul.f32 0.015625, %v1651_v17  ;;  %v2861_v8 = vmul.f32 -1.442695, %v5089_v54 }
 0x3af   :  { %v3642_v36 = vpop.eup %3641  ;;  %v2004_v31 = vadd.f32 0.001, %v1940_v43  ;;  %v2257_v24 = vadd.f32 1.0, %v3640_v12  ;;  %v1878_v34 = vmul.f32 %v5083_v48, %v5083_v48  ;;  %v2100_v5 = vmul.f32 %v5107_v21, %v2064_v44 }
 0x3b0   :  { %v3644_v38 = vpop.eup %3643  ;;  %3257 = vmatmul.mubr.msk.f32.gmra.mrb[30].mxu0 %vm418_vm1, %v2350_v7  ;;  %v2003_v56 = vadd.f32 0.001, %v1939_v47  ;;  %v1877_v23 = vmul.f32 %v5086_v52, %v5086_v52  ;;  %v2351_v11 = vmul.f32 %v3642_v36, %v5005_v60  ;;  %v1814_v26 = vpop.xlane.xlu1 %1813  ;;  %v2099_v60 = vmul.f32 %v5107_v21, %v2063_v28 }
 0x3b1   :  { %3655 = vrsqrt.f32 %v2004_v31  ;;  %v1846_v53 = vmul.f32 0.015625, %v1814_v26  ;;  %v1811_v3 = vpop.xlane.xlu0 %1810  ;;  %v2258_v18 = vadd.f32 1.0, %v3644_v38  ;;  %v5124_v16 = vadd.f32 %v5115_v9, %v2100_v5 }
 0x3b2   :  { %3657 = vrsqrt.f32 %v2003_v56  ;;  %3259 = vmatprep.mubr.msk.f32.mxu0 %vm418_vm1, %v2351_v11  ;;  %v1845_v4 = vmul.f32 0.015625, %v1811_v3  ;;  %v5118_v27 = vadd.f32 %v5115_v9, %v2099_v60  ;;  %v1972_v28 = vsub.f32 %v4723_v29, %v5057_v1 }
 0x3b3   :  { %v3646_v58 = vpop.eup %3645  ;;  %v1910_v42 = vsub.f32 %v1846_v53, %v1878_v34  ;;  %3659 = vrcp.f32 %v2257_v24  ;;  %v1971_v47 = vsub.f32 %v4725_v41, %v5063_v6 }
 0x3b4   :  { %v3648_v61 = vpop.eup %3647  ;;  %v1909_v0 = vsub.f32 %v1845_v4, %v1877_v23  ;;  %3661 = vrcp.f32 %v2258_v18  ;;  %v2066_v2 = vmul.f32 %v3646_v58, %v1970_v20  ;;  %v2863_v45 = vmul.f32 -1.442695, %v5118_v27 }
 0x3b5   :  { %v3650_v32 = vpop.eup %3649  ;;  %v1942_v59 = vmax.f32 %v1910_v42, 0.0  ;;  %3663 = vpow2.f32 %v2861_v8  ;;  %v2065_v62 = vmul.f32 %v3648_v61, %v1969_v35  ;;  %v1973_v4 = vsub.f32 %v4731_v19, %v5086_v52 }
 0x3b6   :  { %v3652_v10 = vpop.eup %3651  ;;  %v2352_v37 = vmul.f32 %v3650_v32, %v5008_v39  ;;  %v1941_v57 = vmax.f32 %v1909_v0, 0.0  ;;  %3665 = vpow2.f32 %v2862_v15  ;;  %v2102_v43 = vmul.f32 %v5107_v21, %v2066_v2 }
 0x3b7   :  { %v3654_v51 = vpop.eup %3653  ;;  %v2006_v63 = vadd.f32 0.001, %v1942_v59  ;;  %v2259_v14 = vadd.f32 1.0, %v3652_v10  ;;  %v2101_v50 = vmul.f32 %v5107_v21, %v2065_v62  ;;  %3667 = vpow2.f32 %v2863_v45 }
 0x3b8   :  { %3260 = vmatmul.mubr.msk.f32.gmra.mrb[32].mxu0 %vm418_vm1, %v2352_v37  ;;  %v2005_v22 = vadd.f32 0.001, %v1941_v57  ;;  %v2260_v13 = vadd.f32 1.0, %v3654_v51  ;;  %v2864_v39 = vmul.f32 -1.442695, %v5124_v16  ;;  %v5136_v12 = vadd.f32 %v5115_v9, %v2102_v43 }
 0x3b9   :  { %3669 = vrsqrt.f32 %v2006_v63  ;;  %v5131_v17 = vadd.f32 %v5115_v9, %v2101_v50 }
 0x3ba   :  { %3671 = vrsqrt.f32 %v2005_v22  ;;  %v2866_v20 = vmul.f32 -1.442695, %v5136_v12 }
 0x3bb   :  { %v3656_v7 = vpop.eup %3655  ;;  %3673 = vrcp.f32 %v2259_v14  ;;  %v2865_v36 = vmul.f32 -1.442695, %v5131_v17 }
 0x3bc   :  { %v3658_v33 = vpop.eup %3657  ;;  %3675 = vrcp.f32 %v2260_v13  ;;  %v2068_v31 = vmul.f32 %v3656_v7, %v1972_v28 }
 0x3bd   :  { %v3660_v24 = vpop.eup %3659  ;;  %3677 = vpow2.f32 %v2864_v39  ;;  %v2067_v38 = vmul.f32 %v3658_v33, %v1971_v47 }
 0x3be   :  { %v3662_v29 = vpop.eup %3661  ;;  %v2353_v1 = vmul.f32 %v3660_v24, %v5034_v46  ;;  %3679 = vpow2.f32 %v2865_v36  ;;  %v2104_v56 = vmul.f32 %v5107_v21, %v2068_v31 }
 0x3bf   :  { %v3664_v34 = vpop.eup %3663  ;;  %v2354_v41 = vmul.f32 %v3662_v29, %v5029_v40  ;;  %3681 = vpow2.f32 %v2866_v20  ;;  %v2103_v6 = vmul.f32 %v5107_v21, %v2067_v38  ;;  %v1974_v40 = vsub.f32 %v4729_v30, %v5083_v48 }
 0x3c0   :  { %v3666_v23 = vpop.eup %3665  ;;  %3262 = vmatprep.mubr.msk.f32.mxu0 %vm418_vm1, %v2353_v1  ;;  %v2261_v11 = vadd.f32 1.0, %v3664_v34  ;;  %v5148_v26 = vadd.f32 %v5115_v9, %v2104_v56 }
 0x3c1   :  { %3263 = vmatmul.mubr.msk.f32.gmra.mrb[34].mxu0 %vm418_vm1, %v2354_v41  ;;  %v2262_v53 = vadd.f32 1.0, %v3666_v23  ;;  %v5152_v46 = vadd.f32 %v5115_v9, %v2103_v6  ;;  %v3668_v3 = vpop.eup %3667 }
 0x3c2   :  { %3683 = vrcp.f32 %v2261_v11  ;;  %v2868_v18 = vmul.f32 -1.442695, %v5148_v26  ;;  %v2263_v15 = vadd.f32 1.0, %v3668_v3 }
 0x3c3   :  { %v3670_v8 = vpop.eup %3669  ;;  %3685 = vrcp.f32 %v2262_v53  ;;  %v2867_v60 = vmul.f32 -1.442695, %v5152_v46 }
 0x3c4   :  { %v3672_v58 = vpop.eup %3671  ;;  %3687 = vpow2.f32 %v2868_v18  ;;  %v2070_v35 = vmul.f32 %v3670_v8, %v1974_v40 }
 0x3c5   :  { %v3674_v42 = vpop.eup %3673  ;;  %3689 = vrcp.f32 %v2263_v15  ;;  %v2069_v44 = vmul.f32 %v3672_v58, %v1973_v4 }
 0x3c6   :  { %v3676_v61 = vpop.eup %3675  ;;  %v2355_v30 = vmul.f32 %v3674_v42, %v5060_v49  ;;  %3691 = vpow2.f32 %v2867_v60  ;;  %v2106_v48 = vmul.f32 %v5107_v21, %v2070_v35 }
 0x3c7   :  { %v3678_v0 = vpop.eup %3677  ;;  %v2356_v2 = vmul.f32 %v3676_v61, %v5055_v25  ;;  %v2105_v19 = vmul.f32 %v5107_v21, %v2069_v44 }
 0x3c8   :  { %v3680_v52 = vpop.eup %3679  ;;  %3265 = vmatprep.mubr.msk.f32.mxu0 %vm418_vm1, %v2355_v30  ;;  %v2264_v32 = vadd.f32 1.0, %v3678_v0  ;;  %v2142_v59 = vadd.f32 %v5115_v9, %v2106_v48 }
 0x3c9   :  { %v3682_v5 = vpop.eup %3681  ;;  %3266 = vmatmul.mubr.msk.f32.gmra.mrb[36].mxu0 %vm418_vm1, %v2356_v2  ;;  %v2265_v62 = vadd.f32 1.0, %v3680_v52  ;;  %v2141_v49 = vadd.f32 %v5115_v9, %v2105_v19 }
 0x3ca   :  { %3693 = vrcp.f32 %v2264_v32  ;;  %v2266_v10 = vadd.f32 1.0, %v3682_v5  ;;  %v2870_v37 = vmul.f32 -1.442695, %v2142_v59 }
 0x3cb   :  { %3695 = vrcp.f32 %v2265_v62  ;;  %v2869_v57 = vmul.f32 -1.442695, %v2141_v49 }
 0x3cc   :  { %v3684_v25 = vpop.eup %3683  ;;  %3697 = vrcp.f32 %v2266_v10 }
 0x3cd   :  { %v3686_v21 = vpop.eup %3685  ;;  %v2357_v45 = vmul.f32 %v3684_v25, %v5089_v54  ;;  %3699 = vpow2.f32 %v2869_v57 }
 0x3ce   :  { %v3688_v51 = vpop.eup %3687  ;;  %v2358_v63 = vmul.f32 %v3686_v21, %v5081_v55  ;;  %3701 = vpow2.f32 %v2870_v37 }
 0x3cf   :  { %v3690_v14 = vpop.eup %3689  ;;  %3268 = vmatprep.mubr.msk.f32.mxu0 %vm418_vm1, %v2357_v45  ;;  %v2268_v50 = vadd.f32 1.0, %v3688_v51 }
 0x3d0   :  { %v3692_v9 = vpop.eup %3691  ;;  %3269 = vmatmul.mubr.msk.f32.gmra.mrb[38].mxu0 %vm418_vm1, %v2358_v63  ;;  %v2359_v22 = vmul.f32 %v3690_v14, %v5118_v27 }
 0x3d1   :  { %v2267_v13 = vadd.f32 1.0, %v3692_v9  ;;  %3703 = vrcp.f32 %v2268_v50 }
 0x3d2   :  { %3271 = vmatprep.mubr.msk.f32.mxu0 %vm418_vm1, %v2359_v22 }
 0x3d3   :  { %3705 = vrcp.f32 %v2267_v13 }
 0x3d4   :  { %v3694_v54 = vpop.eup %3693 }
 0x3d5   :  { %v3696_v43 = vpop.eup %3695  ;;  %v2360_v39 = vmul.f32 %v3694_v54, %v5124_v16 }
 0x3d6   :  { %v3698_v55 = vpop.eup %3697  ;;  %v2361_v28 = vmul.f32 %v3696_v43, %v5131_v17 }
 0x3d7   :  { %v3700_v7 = vpop.eup %3699  ;;  %3272 = vmatmul.mubr.msk.f32.gmra.mrb[40].mxu0 %vm418_vm1, %v2360_v39  ;;  %v2362_v27 = vmul.f32 %v3698_v55, %v5136_v12  ;;  %v5189_v12 = vld [vmem:[%s5357_s6] ss:$0 sm:$0xff] }
 0x3d8   :  { %v3702_v47 = vpop.eup %3701  ;;  %3274 = vmatprep.mubr.msk.f32.mxu0 %vm418_vm1, %v2361_v28  ;;  %v2269_v36 = vadd.f32 1.0, %v3700_v7 }
 0x3d9   :  { %v2270_v33 = vadd.f32 1.0, %v3702_v47 }
 0x3da   :  { %3707 = vrcp.f32 %v2269_v36 }
 0x3db   :  { %3275 = vmatmul.mubr.msk.f32.gmra.mrb[42].mxu0 %vm418_vm1, %v2362_v27  ;;  %3709 = vrcp.f32 %v2270_v33  ;;  %v3704_v20 = vpop.eup %3703 }
 0x3dc   :  { %v2364_v17 = vmul.f32 %v3704_v20, %v5148_v26 }
 0x3dd   :  { %v3706_v31 = vpop.eup %3705 }
 0x3de   :  { %v2363_v16 = vmul.f32 %v3706_v31, %v5152_v46 }
 0x3e0   :  { %3277 = vmatprep.mubr.msk.f32.mxu0 %vm418_vm1, %v2363_v16 }
 0x3e1   :  { %3278 = vmatmul.mubr.msk.f32.gmra.mrb[44].mxu0 %vm418_vm1, %v2364_v17 }
 0x3e4   :  { %v3708_v24 = vpop.eup %3707 }
 0x3e5   :  { %v3710_v38 = vpop.eup %3709  ;;  %v2365_v29 = vmul.f32 %v3708_v24, %v2141_v49 }
 0x3e6   :  { %v2366_v1 = vmul.f32 %v3710_v38, %v2142_v59 }
 0x3e7   :  { %3280 = vmatprep.mubr.msk.f32.mxu0 %vm418_vm1, %v2365_v29 }
 0x3e8   :  { %3281 = vmatmul.mubr.msk.f32.gmra.mrb[46].mxu0 %vm418_vm1, %v2366_v1 }
 0x426   :  { %v3237_v56 = vpop.f32.mrb[16].mxu0 }
 0x427   :  { %v2550_v34 = vadd.f32 %v3237_v56, %v5189_v12  ;;  %v2544_v41 = vpop.f32.mrb[17].mxu0 }
 0x428   :  { %v2545_v6 = vadd.f32 %v5189_v12, %v2544_v41 }
 0x429   :  { %2704 = vst.msk [vmem:[%s5358_s7 + $0x8] sm:$0xff] %vm94_vm0, %v2550_v34 }
 0x42a   :  { %2703 = vst.msk [vmem:[%s5358_s7] sm:$0xff] %vm94_vm0, %v2545_v6 }
 0x436   :  { %v3240_v23 = vpop.f32.mrb[18].mxu0 }
 0x437   :  { %v2560_v11 = vadd.f32 %v3240_v23, %v5189_v12  ;;  %v2554_v26 = vpop.f32.mrb[19].mxu0 }
 0x438   :  { %v2555_v53 = vadd.f32 %v5189_v12, %v2554_v26 }
 0x439   :  { %2706 = vst.msk [vmem:[%s5358_s7 + $0x18] sm:$0xff] %vm94_vm0, %v2560_v11 }
 0x43a   :  { %2705 = vst.msk [vmem:[%s5358_s7 + $0x10] sm:$0xff] %vm94_vm0, %v2555_v53 }
 0x445   :  { %v3243_v46 = vpop.f32.mrb[20].mxu0 }
 0x446   :  { %v2570_v3 = vadd.f32 %v3243_v46, %v5189_v12  ;;  %v2564_v40 = vpop.f32.mrb[21].mxu0 }
 0x447   :  { %v2565_v18 = vadd.f32 %v5189_v12, %v2564_v40 }
 0x448   :  { %2708 = vst.msk [vmem:[%s5358_s7 + $0x28] sm:$0xff] %vm94_vm0, %v2570_v3 }
 0x449   :  { %2707 = vst.msk [vmem:[%s5358_s7 + $0x20] sm:$0xff] %vm94_vm0, %v2565_v18 }
 0x45b   :  { %v3246_v8 = vpop.f32.mrb[22].mxu0 }
 0x45c   :  { %v2580_v4 = vadd.f32 %v3246_v8, %v5189_v12  ;;  %v2574_v15 = vpop.f32.mrb[23].mxu0 }
 0x45d   :  { %v2575_v60 = vadd.f32 %v5189_v12, %v2574_v15 }
 0x45e   :  { %2710 = vst.msk [vmem:[%s5358_s7 + $0x38] sm:$0xff] %vm94_vm0, %v2580_v4 }
 0x45f   :  { %2709 = vst.msk [vmem:[%s5358_s7 + $0x30] sm:$0xff] %vm94_vm0, %v2575_v60 }
 0x463   :  { %v3249_v58 = vpop.f32.mrb[24].mxu0 }
 0x464   :  { %v2590_v35 = vadd.f32 %v3249_v58, %v5189_v12  ;;  %v2584_v42 = vpop.f32.mrb[25].mxu0 }
 0x465   :  { %v2585_v44 = vadd.f32 %v5189_v12, %v2584_v42 }
 0x466   :  { %2712 = vst.msk [vmem:[%s5358_s7 + $0x48] sm:$0xff] %vm94_vm0, %v2590_v35 }
 0x467   :  { %2711 = vst.msk [vmem:[%s5358_s7 + $0x40] sm:$0xff] %vm94_vm0, %v2585_v44 }
 0x474   :  { %v3252_v61 = vpop.f32.mrb[26].mxu0 }
 0x475   :  { %v2600_v30 = vadd.f32 %v3252_v61, %v5189_v12  ;;  %v2594_v48 = vpop.f32.mrb[27].mxu0 }
 0x476   :  { %v2595_v0 = vadd.f32 %v5189_v12, %v2594_v48 }
 0x477   :  { %2714 = vst.msk [vmem:[%s5358_s7 + $0x58] sm:$0xff] %vm94_vm0, %v2600_v30 }
 0x478   :  { %2713 = vst.msk [vmem:[%s5358_s7 + $0x50] sm:$0xff] %vm94_vm0, %v2595_v0 }
 0x47b   :  { %v3255_v2 = vpop.f32.mrb[28].mxu0 }
 0x47c   :  { %v2610_v19 = vadd.f32 %v3255_v2, %v5189_v12  ;;  %v2604_v52 = vpop.f32.mrb[29].mxu0 }
 0x47d   :  { %v2605_v32 = vadd.f32 %v5189_v12, %v2604_v52 }
 0x47e   :  { %2716 = vst.msk [vmem:[%s5358_s7 + $0x68] sm:$0xff] %vm94_vm0, %v2610_v19 }
 0x47f   :  { %2715 = vst.msk [vmem:[%s5358_s7 + $0x60] sm:$0xff] %vm94_vm0, %v2605_v32 }
 0x483   :  { %v3258_v59 = vpop.f32.mrb[30].mxu0 }
 0x484   :  { %v2620_v5 = vadd.f32 %v3258_v59, %v5189_v12  ;;  %v2614_v62 = vpop.f32.mrb[31].mxu0 }
 0x485   :  { %v2615_v49 = vadd.f32 %v5189_v12, %v2614_v62 }
 0x486   :  { %2718 = vst.msk [vmem:[%s5358_s7 + $0x78] sm:$0xff] %vm94_vm0, %v2620_v5 }
 0x487   :  { %2717 = vst.msk [vmem:[%s5358_s7 + $0x70] sm:$0xff] %vm94_vm0, %v2615_v49 }
 0x48b   :  { %v3261_v10 = vpop.f32.mrb[32].mxu0 }
 0x48c   :  { %v2630_v37 = vadd.f32 %v3261_v10, %v5189_v12  ;;  %v2624_v57 = vpop.f32.mrb[33].mxu0 }
 0x48d   :  { %v2625_v25 = vadd.f32 %v5189_v12, %v2624_v57 }
 0x48e   :  { %2720 = vst.msk [vmem:[%s5358_s7 + $0x88] sm:$0xff] %vm94_vm0, %v2630_v37 }
 0x48f   :  { %2719 = vst.msk [vmem:[%s5358_s7 + $0x80] sm:$0xff] %vm94_vm0, %v2625_v25 }
 0x494   :  { %v3264_v21 = vpop.f32.mrb[34].mxu0 }
 0x495   :  { %v2640_v45 = vadd.f32 %v3264_v21, %v5189_v12  ;;  %v2634_v51 = vpop.f32.mrb[35].mxu0 }
 0x496   :  { %v2635_v63 = vadd.f32 %v5189_v12, %v2634_v51 }
 0x497   :  { %2722 = vst.msk [vmem:[%s5358_s7 + $0x98] sm:$0xff] %vm94_vm0, %v2640_v45 }
 0x498   :  { %2721 = vst.msk [vmem:[%s5358_s7 + $0x90] sm:$0xff] %vm94_vm0, %v2635_v63 }
 0x49c   :  { %v3267_v14 = vpop.f32.mrb[36].mxu0 }
 0x49d   :  { %v2650_v50 = vadd.f32 %v3267_v14, %v5189_v12  ;;  %v2644_v9 = vpop.f32.mrb[37].mxu0 }
 0x49e   :  { %v2645_v22 = vadd.f32 %v5189_v12, %v2644_v9 }
 0x49f   :  { %2724 = vst.msk [vmem:[%s5358_s7 + $0xa8] sm:$0xff] %vm94_vm0, %v2650_v50 }
 0x4a0   :  { %2723 = vst.msk [vmem:[%s5358_s7 + $0xa0] sm:$0xff] %vm94_vm0, %v2645_v22 }
 0x4a3   :  { %v3270_v13 = vpop.f32.mrb[38].mxu0 }
 0x4a4   :  { %v2660_v54 = vadd.f32 %v3270_v13, %v5189_v12  ;;  %v2654_v43 = vpop.f32.mrb[39].mxu0 }
 0x4a5   :  { %v2655_v39 = vadd.f32 %v5189_v12, %v2654_v43 }
 0x4a6   :  { %2726 = vst.msk [vmem:[%s5358_s7 + $0xb8] sm:$0xff] %vm94_vm0, %v2660_v54 }
 0x4a7   :  { %2725 = vst.msk [vmem:[%s5358_s7 + $0xb0] sm:$0xff] %vm94_vm0, %v2655_v39 }
 0x4aa   :  { %v3273_v55 = vpop.f32.mrb[40].mxu0 }
 0x4ab   :  { %v2670_v28 = vadd.f32 %v3273_v55, %v5189_v12  ;;  %v2664_v7 = vpop.f32.mrb[41].mxu0 }
 0x4ac   :  { %v2665_v47 = vadd.f32 %v5189_v12, %v2664_v7 }
 0x4ad   :  { %2728 = vst.msk [vmem:[%s5358_s7 + $0xc8] sm:$0xff] %vm94_vm0, %v2670_v28 }
 0x4ae   :  { %2727 = vst.msk [vmem:[%s5358_s7 + $0xc0] sm:$0xff] %vm94_vm0, %v2665_v47  ;;  %v3276_v36 = vpop.f32.mrb[42].mxu0 }
 0x4af   :  { %v2680_v27 = vadd.f32 %v3276_v36, %v5189_v12  ;;  %v2674_v33 = vpop.f32.mrb[43].mxu0 }
 0x4b0   :  { %v2675_v20 = vadd.f32 %v5189_v12, %v2674_v33 }
 0x4b1   :  { %2730 = vst.msk [vmem:[%s5358_s7 + $0xd8] sm:$0xff] %vm94_vm0, %v2680_v27 }
 0x4b2   :  { %2729 = vst.msk [vmem:[%s5358_s7 + $0xd0] sm:$0xff] %vm94_vm0, %v2675_v20 }
 0x4b4   :  { %v3279_v31 = vpop.f32.mrb[44].mxu0 }
 0x4b5   :  { %v2690_v16 = vadd.f32 %v3279_v31, %v5189_v12  ;;  %v2684_v17 = vpop.f32.mrb[45].mxu0 }
 0x4b6   :  { %v2685_v24 = vadd.f32 %v5189_v12, %v2684_v17 }
 0x4b7   :  { %2732 = vst.msk [vmem:[%s5358_s7 + $0xe8] sm:$0xff] %vm94_vm0, %v2690_v16 }
 0x4b8   :  { %2731 = vst.msk [vmem:[%s5358_s7 + $0xe0] sm:$0xff] %vm94_vm0, %v2685_v24 }
 0x4bb   :  { %v3282_v38 = vpop.f32.mrb[46].mxu0 }
 0x4bc   :  { %v2700_v29 = vadd.f32 %v3282_v38, %v5189_v12  ;;  %v2694_v1 = vpop.f32.mrb[47].mxu0 }
 0x4bd   :  { %v2695_v56 = vadd.f32 %v5189_v12, %v2694_v1 }
 0x4be   :  { %2734 = vst.msk [vmem:[%s5358_s7 + $0xf8] sm:$0xff] %vm94_vm0, %v2700_v29 }
 0x4bf   :  { %2733 = vst.msk [vmem:[%s5358_s7 + $0xf0] sm:$0xff] %vm94_vm0, %v2695_v56 }

</bundles_post_ra>
